<compile_context>
chip_gen: v7x
topology: tpu7x:2x2x1
jax: 0.10.0
libtpu: 0.0.40
codegen_flags: <defaults>
</compile_context>

<pallas_src>
import functools

import jax
import jax.numpy as jnp
import numpy as np
from jax.experimental import pallas as pl
from jax.experimental.pallas import tpu as pltpu

LRELU_SLOPE = 0.1


def get_padding(kernel_size, dilation=1):
    return int((kernel_size * dilation - dilation) / 2)


def _round_up(x, m):
    return ((x + m - 1) // m) * m


# ----------------------- Pallas kernel: tiled matmul + bias + leaky_relu ----------
def _mm_bias_act_kernel(x_ref, w_ref, b_ref, o_ref, acc_ref, *, slope):
    k = pl.program_id(2)

    @pl.when(k == 0)
    def _():
        acc_ref[...] = jnp.zeros_like(acc_ref)

    # bf16 operands, f32 accumulation on the MXU.
    acc_ref[...] += jnp.dot(x_ref[...], w_ref[...],
                            preferred_element_type=jnp.float32)

    @pl.when(k == pl.num_programs(2) - 1)
    def _():
        acc = acc_ref[...] + b_ref[...]          # (1, TN) broadcasts over rows, f32
        if slope is not None:
            acc = jnp.where(acc >= 0.0, acc, slope * acc)
        o_ref[...] = acc.astype(o_ref.dtype)


def _tiling(KC, Cout):
    """Pick contraction / output-channel padding and tile sizes."""
    KC_p = _round_up(KC, 16)
    if KC_p > 1024:                      # tile the contraction for wide layers
        KC_p = _round_up(KC, 512)
        TK = 512
    else:                                # single K step; block == full (padded) dim
        TK = KC_p
    Co_p = _round_up(Cout, 128)
    TN = 256 if Co_p % 256 == 0 else 128
    return KC_p, TK, Co_p, TN


def matmul_bias_act(patches, w_pad, b_pad, Cout, KC_p, TK, Co_p, TN, slope):
    """patches: (M, KC) bf16; w_pad: (KC_p, Co_p) bf16; b_pad: (1, Co_p) f32."""
    M, KC = patches.shape
    TM = min(256, _round_up(M, 16))
    M_p = _round_up(M, TM)
    x_p = jnp.pad(patches, ((0, M_p - M), (0, KC_p - KC)))

    out = pl.pallas_call(
        functools.partial(_mm_bias_act_kernel, slope=slope),
        out_shape=jax.ShapeDtypeStruct((M_p, Co_p), jnp.float32),
        grid=(M_p // TM, Co_p // TN, KC_p // TK),
        in_specs=[
            pl.BlockSpec((TM, TK), lambda i, j, k: (i, k)),
            pl.BlockSpec((TK, TN), lambda i, j, k: (k, j)),
            pl.BlockSpec((1, TN), lambda i, j, k: (0, j)),
        ],
        out_specs=pl.BlockSpec((TM, TN), lambda i, j, k: (i, j)),
        scratch_shapes=[pltpu.VMEM((TM, TN), jnp.float32)],
        compiler_params=pltpu.CompilerParams(
            dimension_semantics=("parallel", "parallel", "arbitrary")),
        cost_estimate=pl.CostEstimate(
            flops=2 * M_p * KC_p * Co_p,
            transcendentals=0,
            bytes_accessed=M_p * KC_p * 2 + KC_p * Co_p * 2
                           + Co_p * 4 + M_p * Co_p * 4),
    )(x_p, w_pad, b_pad)
    return out[:M, :Cout]


# ----------------------- Conv2d with (K,1) kernel, row-major layout ---------------
def conv_time_rowmajor(x_rows, lyr, slope):
    """x_rows: (R, H, Cin) (any float dtype); lyr: prepared conv -> (R, H_out, Cout) f32."""
    R, H, Cin = x_rows.shape
    K, stride, pad = lyr["K"], lyr["stride"], lyr["pad"]
    H_out = (H + 2 * pad - K) // stride + 1

    x = x_rows.astype(jnp.bfloat16)
    xp = jnp.pad(x, ((0, 0), (pad, pad), (0, 0)))
    # im2col along H (k-major, then Cin — matches the weight flattening order).
    cols = [xp[:, k:k + stride * (H_out - 1) + 1:stride, :] for k in range(K)]
    patches = jnp.stack(cols, axis=2).reshape(R * H_out, K * Cin)

    out = matmul_bias_act(patches, lyr["w2"], lyr["b2"], lyr["Cout"],
                          lyr["KC_p"], lyr["TK"], lyr["Co_p"], lyr["TN"], slope)
    return out.reshape(R, H_out, lyr["Cout"])


# ----------------------- Parameter construction (deterministic) -------------------
def init_discriminator_p(key, period, kernel_size=5, stride=3, max_channels=1024):
    mc = max_channels
    chan = [(1, 32), (32, 128),
            (min(mc, 128), min(mc, 512)),
            (min(mc, 512), min(mc, 1024)),
            (min(mc, 1024), min(mc, 1024))]
    convs = []
    for i, (cin, cout) in enumerate(chan):
        kw, kb = jax.random.split(jax.random.fold_in(key, i))
        convs.append(dict(
            w=0.05 * jax.random.normal(kw, (cout, cin, kernel_size, 1), jnp.float32),
            b=0.05 * jax.random.normal(kb, (cout,), jnp.float32),
            stride=(stride if i < 4 else 1),
            pad=get_padding(5, 1)))
    kw, kb = jax.random.split(jax.random.fold_in(key, 100))
    conv_post = dict(
        w=0.05 * jax.random.normal(kw, (1, min(mc, 1024), 3, 1), jnp.float32),
        b=0.05 * jax.random.normal(kb, (1,), jnp.float32),
        stride=1, pad=1)
    return dict(period=period, convs=convs, conv_post=conv_post)


def init_multi_period_discriminator(key, max_channels=1024):
    periods = [2, 3, 5, 7, 11]
    return [init_discriminator_p(jax.random.fold_in(key, i), p, max_channels=max_channels)
            for i, p in enumerate(periods)]


# ----------------------- One-time weight preparation (pad/reshape/bf16) -----------
def _prepare_conv(raw):
    w, b = raw["w"], raw["b"]                       # (Cout, Cin, K, 1) f32, (Cout,)
    Cout, Cin, K, _ = w.shape
    KC = K * Cin
    KC_p, TK, Co_p, TN = _tiling(KC, Cout)
    w2 = jnp.transpose(w[:, :, :, 0], (2, 1, 0)).reshape(KC, Cout)   # (K*Cin, Cout)
    w2 = jnp.pad(w2, ((0, KC_p - KC), (0, Co_p - Cout))).astype(jnp.bfloat16)
    b2 = jnp.pad(b, (0, Co_p - Cout)).reshape(1, Co_p).astype(jnp.float32)
    return dict(w2=w2, b2=b2, K=K, Cin=Cin, Cout=Cout,
                stride=raw["stride"], pad=raw["pad"],
                KC_p=KC_p, TK=TK, Co_p=Co_p, TN=TN)


def prepare_discriminator_p(raw):
    return dict(period=raw["period"],
                convs=[_prepare_conv(c) for c in raw["convs"]],
                conv_post=_prepare_conv(raw["conv_post"]))


def prepare_multi_period(raw_list):
    return [prepare_discriminator_p(r) for r in raw_list]


# ----------------------- Forward passes -------------------------------------------
def _rows_to_nchw(rows, b, period):
    R, H, C = rows.shape                            # R = b * period
    return jnp.transpose(rows.reshape(b, period, H, C), (0, 3, 2, 1))


def discriminator_p_forward(prepared, x):
    period = prepared["period"]
    b, c, t = x.shape
    if t % period != 0:
        n_pad = period - t % period
        x = jnp.pad(x, ((0, 0), (0, 0), (0, n_pad)), mode="reflect")
        t = t + n_pad
    H = t // period
    x4 = x.reshape(b, c, H, period)                                   # NCHW
    cur = jnp.transpose(x4, (0, 3, 2, 1)).reshape(b * period, H, c)   # (B*P, H, C)

    outputs = []
    for lyr in prepared["convs"]:
        cur = conv_time_rowmajor(cur, lyr, LRELU_SLOPE)   # (B*P, H_out, Cout) f32
        outputs.append(_rows_to_nchw(cur, b, period))
    post = conv_time_rowmajor(cur, prepared["conv_post"], None)
    outputs.append(_rows_to_nchw(post, b, period))
    return outputs


def multi_period_discriminator_forward(prepared_list, y):
    return [discriminator_p_forward(p, y) for p in prepared_list]


# ----------------------- Pure-JAX reference (for verification) --------------------
def _ref_conv(x, w, b, stride, pad):
    out = jax.lax.conv_general_dilated(
        x.astype(jnp.bfloat16), w.astype(jnp.bfloat16),
        window_strides=(stride, 1), padding=((pad, pad), (0, 0)),
        dimension_numbers=("NCHW", "OIHW", "NCHW"),
        preferred_element_type=jnp.float32)
    return out + b[None, :, None, None]


def _ref_disc_p(raw, x):
    period = raw["period"]
    b, c, t = x.shape
    if t % period != 0:
        n_pad = period - t % period
        x = jnp.pad(x, ((0, 0), (0, 0), (0, n_pad)), mode="reflect")
        t = t + n_pad
    x = x.reshape(b, c, t // period, period)
    outs = []
    for lyr in raw["convs"]:
        y = _ref_conv(x, lyr["w"], lyr["b"], lyr["stride"], lyr["pad"])
        x = jnp.where(y >= 0, y, LRELU_SLOPE * y)
        outs.append(x)
    lyr = raw["conv_post"]
    outs.append(_ref_conv(x, lyr["w"], lyr["b"], lyr["stride"], lyr["pad"]))
    return outs


if __name__ == "__main__":
    key = jax.random.PRNGKey(0)
    kp, kx = jax.random.split(key)

    # Small demo: batch=2, 1 channel, 256 samples.  max_channels=128 keeps channel
    # widths small (1->32->128->128->128->128->1) while exercising every layer and
    # all 5 periods (2, 3, 5, 7, 11).
    B, C, T = 2, 1, 256
    y = jax.random.normal(kx, (B, C, T), jnp.float32)

    raw_params = init_multi_period_discriminator(kp, max_channels=128)
    prepared = prepare_multi_period(raw_params)

    forward = jax.jit(functools.partial(multi_period_discriminator_forward, prepared))
    outputs = jax.block_until_ready(forward(y))

    # Verify against a pure-JAX (lax.conv, bf16 operands / f32 accumulation) reference
    # of the PyTorch forward pass.
    for raw_p, outs in zip(raw_params, outputs):
        ref_outs = _ref_disc_p(raw_p, y)
        assert len(outs) == 6
        for o, r in zip(outs, ref_outs):
            assert o.shape == r.shape, (o.shape, r.shape)
            np.testing.assert_allclose(np.asarray(o), np.asarray(r),
                                       rtol=5e-3, atol=5e-3)

    print("KERNEL_OK")
</pallas_src>

<mosaic_0001>
module attributes {stable_mosaic.version = 11 : i64} {
  func.func @_mm_bias_act_kernel(%arg0: i32, %arg1: i32, %arg2: i32, %arg3: memref<176x16xbf16, #tpu.memory_space<vmem>>, %arg4: memref<16x128xbf16, #tpu.memory_space<vmem>>, %arg5: memref<1x128xf32, #tpu.memory_space<vmem>>, %arg6: memref<176x128xf32, #tpu.memory_space<vmem>>, %arg7: memref<176x128xf32, #tpu.memory_space<vmem>>) attributes {dimension_semantics = [#tpu.dimension_semantics<parallel>, #tpu.dimension_semantics<parallel>, #tpu.dimension_semantics<arbitrary>], iteration_bounds = array<i64: 1, 1, 1>, scalar_prefetch = 0 : i64, scratch_operands = 1 : i64, tpu.core_type = #tpu.core_type<tc>, window_params = [{transform_indices = @transform_0, window_bounds = array<i64: 176, 16>}, {transform_indices = @transform_1, window_bounds = array<i64: 16, 128>}, {transform_indices = @transform_2, window_bounds = array<i64: 1, 128>}, {transform_indices = @transform_3, window_bounds = array<i64: 176, 128>}]} {
    %c0_i32 = arith.constant 0 : i32
    %0 = arith.cmpi eq, %arg2, %c0_i32 : i32
    %1 = arith.extui %0 : i1 to i32
    %c0_i32_0 = arith.constant 0 : i32
    %2 = arith.cmpi ne, %1, %c0_i32_0 : i32
    scf.if %2 {
      %cst_10 = arith.constant 0.000000e+00 : f32
      %12 = vector.broadcast %cst_10 : f32 to vector<176x128xf32>
      %c0_11 = arith.constant 0 : index
      %c0_12 = arith.constant 0 : index
      %13 = vector.load %arg7[%c0_11, %c0_12] : memref<176x128xf32, #tpu.memory_space<vmem>>, vector<176x128xf32>
      tpu.vector_store %arg7[%c0_11, %c0_12], %12 {strides = array<i32>} : memref<176x128xf32, #tpu.memory_space<vmem>>, vector<176x128xf32>,
    } else {
    }
    %c0 = arith.constant 0 : index
    %c0_1 = arith.constant 0 : index
    %3 = vector.load %arg7[%c0, %c0_1] : memref<176x128xf32, #tpu.memory_space<vmem>>, vector<176x128xf32>
    %c0_2 = arith.constant 0 : index
    %c0_3 = arith.constant 0 : index
    %4 = vector.load %arg3[%c0_2, %c0_3] : memref<176x16xbf16, #tpu.memory_space<vmem>>, vector<176x16xbf16>
    %c0_4 = arith.constant 0 : index
    %c0_5 = arith.constant 0 : index
    %5 = vector.load %arg4[%c0_4, %c0_5] : memref<16x128xbf16, #tpu.memory_space<vmem>>, vector<16x128xbf16>
    %cst = arith.constant dense<0.000000e+00> : vector<176x128xf32>
    %6 = tpu.matmul %4, %5, %cst {dimension_numbers = #tpu.dot_dimension_numbers<[1], [0], [0], [1], [0, 0, 1, 1], [], []>} : vector<176x16xbf16>, vector<16x128xbf16>, vector<176x128xf32> -> vector<176x128xf32>
    %7 = arith.addf %3, %6 : vector<176x128xf32>
    %c0_6 = arith.constant 0 : index
    %c0_7 = arith.constant 0 : index
    %8 = vector.load %arg7[%c0_6, %c0_7] : memref<176x128xf32, #tpu.memory_space<vmem>>, vector<176x128xf32>
    tpu.vector_store %arg7[%c0_6, %c0_7], %7 {strides = array<i32>} : memref<176x128xf32, #tpu.memory_space<vmem>>, vector<176x128xf32>,
    %c0_i32_8 = arith.constant 0 : i32
    %9 = arith.cmpi eq, %arg2, %c0_i32_8 : i32
    %10 = arith.extui %9 : i1 to i32
    %c0_i32_9 = arith.constant 0 : i32
    %11 = arith.cmpi ne, %10, %c0_i32_9 : i32
    scf.if %11 {
      %c0_10 = arith.constant 0 : index
      %c0_11 = arith.constant 0 : index
      %12 = vector.load %arg7[%c0_10, %c0_11] : memref<176x128xf32, #tpu.memory_space<vmem>>, vector<176x128xf32>
      %c0_12 = arith.constant 0 : index
      %c0_13 = arith.constant 0 : index
      %13 = vector.load %arg5[%c0_12, %c0_13] : memref<1x128xf32, #tpu.memory_space<vmem>>, vector<1x128xf32>
      %14 = vector.broadcast %13 : vector<1x128xf32> to vector<176x128xf32>
      %15 = arith.addf %12, %14 : vector<176x128xf32>
      %cst_14 = arith.constant 0.000000e+00 : f32
      %16 = vector.broadcast %cst_14 : f32 to vector<176x128xf32>
      %17 = arith.cmpf oge, %15, %16 : vector<176x128xf32>
      %cst_15 = arith.constant 1.000000e-01 : f32
      %18 = vector.broadcast %cst_15 : f32 to vector<176x128xf32>
      %19 = arith.mulf %18, %15 : vector<176x128xf32>
      %20 = arith.select %17, %15, %19 : vector<176x128xi1>, vector<176x128xf32>
      %c0_16 = arith.constant 0 : index
      %c0_17 = arith.constant 0 : index
      %21 = vector.load %arg6[%c0_16, %c0_17] : memref<176x128xf32, #tpu.memory_space<vmem>>, vector<176x128xf32>
      tpu.vector_store %arg6[%c0_16, %c0_17], %20 {strides = array<i32>} : memref<176x128xf32, #tpu.memory_space<vmem>>, vector<176x128xf32>,
    } else {
    }
    return
  }
  func.func @transform_0(%arg0: i32, %arg1: i32, %arg2: i32) -> (i32, i32) {
    %c0_i32 = arith.constant 0 : i32
    return %arg0, %arg2 : i32, i32
  }
  func.func @transform_1(%arg0: i32, %arg1: i32, %arg2: i32) -> (i32, i32) {
    %c0_i32 = arith.constant 0 : i32
    return %arg2, %arg1 : i32, i32
  }
  func.func @transform_2(%arg0: i32, %arg1: i32, %arg2: i32) -> (i32, i32) {
    %c0_i32 = arith.constant 0 : i32
    %c0_i32_0 = arith.constant 0 : i32
    return %c0_i32, %arg1 : i32, i32
  }
  func.func @transform_3(%arg0: i32, %arg1: i32, %arg2: i32) -> (i32, i32) {
    %c0_i32 = arith.constant 0 : i32
    return %arg0, %arg1 : i32, i32
  }
}

module attributes {stable_mosaic.version = 11 : i64} {
  func.func @_mm_bias_act_kernel(%arg0: i32, %arg1: i32, %arg2: i32, %arg3: memref<64x160xbf16, #tpu.memory_space<vmem>>, %arg4: memref<160x128xbf16, #tpu.memory_space<vmem>>, %arg5: memref<1x128xf32, #tpu.memory_space<vmem>>, %arg6: memref<64x128xf32, #tpu.memory_space<vmem>>, %arg7: memref<64x128xf32, #tpu.memory_space<vmem>>) attributes {dimension_semantics = [#tpu.dimension_semantics<parallel>, #tpu.dimension_semantics<parallel>, #tpu.dimension_semantics<arbitrary>], iteration_bounds = array<i64: 1, 1, 1>, scalar_prefetch = 0 : i64, scratch_operands = 1 : i64, tpu.core_type = #tpu.core_type<tc>, window_params = [{transform_indices = @transform_0, window_bounds = array<i64: 64, 160>}, {transform_indices = @transform_1, window_bounds = array<i64: 160, 128>}, {transform_indices = @transform_2, window_bounds = array<i64: 1, 128>}, {transform_indices = @transform_3, window_bounds = array<i64: 64, 128>}]} {
    %c0_i32 = arith.constant 0 : i32
    %0 = arith.cmpi eq, %arg2, %c0_i32 : i32
    %1 = arith.extui %0 : i1 to i32
    %c0_i32_0 = arith.constant 0 : i32
    %2 = arith.cmpi ne, %1, %c0_i32_0 : i32
    scf.if %2 {
      %cst_10 = arith.constant 0.000000e+00 : f32
      %12 = vector.broadcast %cst_10 : f32 to vector<64x128xf32>
      %c0_11 = arith.constant 0 : index
      %c0_12 = arith.constant 0 : index
      %13 = vector.load %arg7[%c0_11, %c0_12] : memref<64x128xf32, #tpu.memory_space<vmem>>, vector<64x128xf32>
      tpu.vector_store %arg7[%c0_11, %c0_12], %12 {strides = array<i32>} : memref<64x128xf32, #tpu.memory_space<vmem>>, vector<64x128xf32>,
    } else {
    }
    %c0 = arith.constant 0 : index
    %c0_1 = arith.constant 0 : index
    %3 = vector.load %arg7[%c0, %c0_1] : memref<64x128xf32, #tpu.memory_space<vmem>>, vector<64x128xf32>
    %c0_2 = arith.constant 0 : index
    %c0_3 = arith.constant 0 : index
    %4 = vector.load %arg3[%c0_2, %c0_3] : memref<64x160xbf16, #tpu.memory_space<vmem>>, vector<64x160xbf16>
    %c0_4 = arith.constant 0 : index
    %c0_5 = arith.constant 0 : index
    %5 = vector.load %arg4[%c0_4, %c0_5] : memref<160x128xbf16, #tpu.memory_space<vmem>>, vector<160x128xbf16>
    %cst = arith.constant dense<0.000000e+00> : vector<64x128xf32>
    %6 = tpu.matmul %4, %5, %cst {dimension_numbers = #tpu.dot_dimension_numbers<[1], [0], [0], [1], [0, 0, 1, 1], [], []>} : vector<64x160xbf16>, vector<160x128xbf16>, vector<64x128xf32> -> vector<64x128xf32>
    %7 = arith.addf %3, %6 : vector<64x128xf32>
    %c0_6 = arith.constant 0 : index
    %c0_7 = arith.constant 0 : index
    %8 = vector.load %arg7[%c0_6, %c0_7] : memref<64x128xf32, #tpu.memory_space<vmem>>, vector<64x128xf32>
    tpu.vector_store %arg7[%c0_6, %c0_7], %7 {strides = array<i32>} : memref<64x128xf32, #tpu.memory_space<vmem>>, vector<64x128xf32>,
    %c0_i32_8 = arith.constant 0 : i32
    %9 = arith.cmpi eq, %arg2, %c0_i32_8 : i32
    %10 = arith.extui %9 : i1 to i32
    %c0_i32_9 = arith.constant 0 : i32
    %11 = arith.cmpi ne, %10, %c0_i32_9 : i32
    scf.if %11 {
      %c0_10 = arith.constant 0 : index
      %c0_11 = arith.constant 0 : index
      %12 = vector.load %arg7[%c0_10, %c0_11] : memref<64x128xf32, #tpu.memory_space<vmem>>, vector<64x128xf32>
      %c0_12 = arith.constant 0 : index
      %c0_13 = arith.constant 0 : index
      %13 = vector.load %arg5[%c0_12, %c0_13] : memref<1x128xf32, #tpu.memory_space<vmem>>, vector<1x128xf32>
      %14 = vector.broadcast %13 : vector<1x128xf32> to vector<64x128xf32>
      %15 = arith.addf %12, %14 : vector<64x128xf32>
      %cst_14 = arith.constant 0.000000e+00 : f32
      %16 = vector.broadcast %cst_14 : f32 to vector<64x128xf32>
      %17 = arith.cmpf oge, %15, %16 : vector<64x128xf32>
      %cst_15 = arith.constant 1.000000e-01 : f32
      %18 = vector.broadcast %cst_15 : f32 to vector<64x128xf32>
      %19 = arith.mulf %18, %15 : vector<64x128xf32>
      %20 = arith.select %17, %15, %19 : vector<64x128xi1>, vector<64x128xf32>
      %c0_16 = arith.constant 0 : index
      %c0_17 = arith.constant 0 : index
      %21 = vector.load %arg6[%c0_16, %c0_17] : memref<64x128xf32, #tpu.memory_space<vmem>>, vector<64x128xf32>
      tpu.vector_store %arg6[%c0_16, %c0_17], %20 {strides = array<i32>} : memref<64x128xf32, #tpu.memory_space<vmem>>, vector<64x128xf32>,
    } else {
    }
    return
  }
  func.func @transform_0(%arg0: i32, %arg1: i32, %arg2: i32) -> (i32, i32) {
    %c0_i32 = arith.constant 0 : i32
    return %arg0, %arg2 : i32, i32
  }
  func.func @transform_1(%arg0: i32, %arg1: i32, %arg2: i32) -> (i32, i32) {
    %c0_i32 = arith.constant 0 : i32
    return %arg2, %arg1 : i32, i32
  }
  func.func @transform_2(%arg0: i32, %arg1: i32, %arg2: i32) -> (i32, i32) {
    %c0_i32 = arith.constant 0 : i32
    %c0_i32_0 = arith.constant 0 : i32
    return %c0_i32, %arg1 : i32, i32
  }
  func.func @transform_3(%arg0: i32, %arg1: i32, %arg2: i32) -> (i32, i32) {
    %c0_i32 = arith.constant 0 : i32
    return %arg0, %arg1 : i32, i32
  }
}

module attributes {stable_mosaic.version = 11 : i64} {
  func.func @_mm_bias_act_kernel(%arg0: i32, %arg1: i32, %arg2: i32, %arg3: memref<32x640xbf16, #tpu.memory_space<vmem>>, %arg4: memref<640x128xbf16, #tpu.memory_space<vmem>>, %arg5: memref<1x128xf32, #tpu.memory_space<vmem>>, %arg6: memref<32x128xf32, #tpu.memory_space<vmem>>, %arg7: memref<32x128xf32, #tpu.memory_space<vmem>>) attributes {dimension_semantics = [#tpu.dimension_semantics<parallel>, #tpu.dimension_semantics<parallel>, #tpu.dimension_semantics<arbitrary>], iteration_bounds = array<i64: 1, 1, 1>, scalar_prefetch = 0 : i64, scratch_operands = 1 : i64, tpu.core_type = #tpu.core_type<tc>, window_params = [{transform_indices = @transform_0, window_bounds = array<i64: 32, 640>}, {transform_indices = @transform_1, window_bounds = array<i64: 640, 128>}, {transform_indices = @transform_2, window_bounds = array<i64: 1, 128>}, {transform_indices = @transform_3, window_bounds = array<i64: 32, 128>}]} {
    %c0_i32 = arith.constant 0 : i32
    %0 = arith.cmpi eq, %arg2, %c0_i32 : i32
    %1 = arith.extui %0 : i1 to i32
    %c0_i32_0 = arith.constant 0 : i32
    %2 = arith.cmpi ne, %1, %c0_i32_0 : i32
    scf.if %2 {
      %cst_10 = arith.constant 0.000000e+00 : f32
      %12 = vector.broadcast %cst_10 : f32 to vector<32x128xf32>
      %c0_11 = arith.constant 0 : index
      %c0_12 = arith.constant 0 : index
      %13 = vector.load %arg7[%c0_11, %c0_12] : memref<32x128xf32, #tpu.memory_space<vmem>>, vector<32x128xf32>
      tpu.vector_store %arg7[%c0_11, %c0_12], %12 {strides = array<i32>} : memref<32x128xf32, #tpu.memory_space<vmem>>, vector<32x128xf32>,
    } else {
    }
    %c0 = arith.constant 0 : index
    %c0_1 = arith.constant 0 : index
    %3 = vector.load %arg7[%c0, %c0_1] : memref<32x128xf32, #tpu.memory_space<vmem>>, vector<32x128xf32>
    %c0_2 = arith.constant 0 : index
    %c0_3 = arith.constant 0 : index
    %4 = vector.load %arg3[%c0_2, %c0_3] : memref<32x640xbf16, #tpu.memory_space<vmem>>, vector<32x640xbf16>
    %c0_4 = arith.constant 0 : index
    %c0_5 = arith.constant 0 : index
    %5 = vector.load %arg4[%c0_4, %c0_5] : memref<640x128xbf16, #tpu.memory_space<vmem>>, vector<640x128xbf16>
    %cst = arith.constant dense<0.000000e+00> : vector<32x128xf32>
    %6 = tpu.matmul %4, %5, %cst {dimension_numbers = #tpu.dot_dimension_numbers<[1], [0], [0], [1], [0, 0, 1, 1], [], []>} : vector<32x640xbf16>, vector<640x128xbf16>, vector<32x128xf32> -> vector<32x128xf32>
    %7 = arith.addf %3, %6 : vector<32x128xf32>
    %c0_6 = arith.constant 0 : index
    %c0_7 = arith.constant 0 : index
    %8 = vector.load %arg7[%c0_6, %c0_7] : memref<32x128xf32, #tpu.memory_space<vmem>>, vector<32x128xf32>
    tpu.vector_store %arg7[%c0_6, %c0_7], %7 {strides = array<i32>} : memref<32x128xf32, #tpu.memory_space<vmem>>, vector<32x128xf32>,
    %c0_i32_8 = arith.constant 0 : i32
    %9 = arith.cmpi eq, %arg2, %c0_i32_8 : i32
    %10 = arith.extui %9 : i1 to i32
    %c0_i32_9 = arith.constant 0 : i32
    %11 = arith.cmpi ne, %10, %c0_i32_9 : i32
    scf.if %11 {
      %c0_10 = arith.constant 0 : index
      %c0_11 = arith.constant 0 : index
      %12 = vector.load %arg7[%c0_10, %c0_11] : memref<32x128xf32, #tpu.memory_space<vmem>>, vector<32x128xf32>
      %c0_12 = arith.constant 0 : index
      %c0_13 = arith.constant 0 : index
      %13 = vector.load %arg5[%c0_12, %c0_13] : memref<1x128xf32, #tpu.memory_space<vmem>>, vector<1x128xf32>
      %14 = vector.broadcast %13 : vector<1x128xf32> to vector<32x128xf32>
      %15 = arith.addf %12, %14 : vector<32x128xf32>
      %cst_14 = arith.constant 0.000000e+00 : f32
      %16 = vector.broadcast %cst_14 : f32 to vector<32x128xf32>
      %17 = arith.cmpf oge, %15, %16 : vector<32x128xf32>
      %cst_15 = arith.constant 1.000000e-01 : f32
      %18 = vector.broadcast %cst_15 : f32 to vector<32x128xf32>
      %19 = arith.mulf %18, %15 : vector<32x128xf32>
      %20 = arith.select %17, %15, %19 : vector<32x128xi1>, vector<32x128xf32>
      %c0_16 = arith.constant 0 : index
      %c0_17 = arith.constant 0 : index
      %21 = vector.load %arg6[%c0_16, %c0_17] : memref<32x128xf32, #tpu.memory_space<vmem>>, vector<32x128xf32>
      tpu.vector_store %arg6[%c0_16, %c0_17], %20 {strides = array<i32>} : memref<32x128xf32, #tpu.memory_space<vmem>>, vector<32x128xf32>,
    } else {
    }
    return
  }
  func.func @transform_0(%arg0: i32, %arg1: i32, %arg2: i32) -> (i32, i32) {
    %c0_i32 = arith.constant 0 : i32
    return %arg0, %arg2 : i32, i32
  }
  func.func @transform_1(%arg0: i32, %arg1: i32, %arg2: i32) -> (i32, i32) {
    %c0_i32 = arith.constant 0 : i32
    return %arg2, %arg1 : i32, i32
  }
  func.func @transform_2(%arg0: i32, %arg1: i32, %arg2: i32) -> (i32, i32) {
    %c0_i32 = arith.constant 0 : i32
    %c0_i32_0 = arith.constant 0 : i32
    return %c0_i32, %arg1 : i32, i32
  }
  func.func @transform_3(%arg0: i32, %arg1: i32, %arg2: i32) -> (i32, i32) {
    %c0_i32 = arith.constant 0 : i32
    return %arg0, %arg1 : i32, i32
  }
}

module attributes {stable_mosaic.version = 11 : i64} {
  func.func @_mm_bias_act_kernel(%arg0: i32, %arg1: i32, %arg2: i32, %arg3: memref<16x640xbf16, #tpu.memory_space<vmem>>, %arg4: memref<640x128xbf16, #tpu.memory_space<vmem>>, %arg5: memref<1x128xf32, #tpu.memory_space<vmem>>, %arg6: memref<16x128xf32, #tpu.memory_space<vmem>>, %arg7: memref<16x128xf32, #tpu.memory_space<vmem>>) attributes {dimension_semantics = [#tpu.dimension_semantics<parallel>, #tpu.dimension_semantics<parallel>, #tpu.dimension_semantics<arbitrary>], iteration_bounds = array<i64: 1, 1, 1>, scalar_prefetch = 0 : i64, scratch_operands = 1 : i64, tpu.core_type = #tpu.core_type<tc>, window_params = [{transform_indices = @transform_0, window_bounds = array<i64: 16, 640>}, {transform_indices = @transform_1, window_bounds = array<i64: 640, 128>}, {transform_indices = @transform_2, window_bounds = array<i64: 1, 128>}, {transform_indices = @transform_3, window_bounds = array<i64: 16, 128>}]} {
    %c0_i32 = arith.constant 0 : i32
    %0 = arith.cmpi eq, %arg2, %c0_i32 : i32
    %1 = arith.extui %0 : i1 to i32
    %c0_i32_0 = arith.constant 0 : i32
    %2 = arith.cmpi ne, %1, %c0_i32_0 : i32
    scf.if %2 {
      %cst_10 = arith.constant 0.000000e+00 : f32
      %12 = vector.broadcast %cst_10 : f32 to vector<16x128xf32>
      %c0_11 = arith.constant 0 : index
      %c0_12 = arith.constant 0 : index
      %13 = vector.load %arg7[%c0_11, %c0_12] : memref<16x128xf32, #tpu.memory_space<vmem>>, vector<16x128xf32>
      tpu.vector_store %arg7[%c0_11, %c0_12], %12 {strides = array<i32>} : memref<16x128xf32, #tpu.memory_space<vmem>>, vector<16x128xf32>,
    } else {
    }
    %c0 = arith.constant 0 : index
    %c0_1 = arith.constant 0 : index
    %3 = vector.load %arg7[%c0, %c0_1] : memref<16x128xf32, #tpu.memory_space<vmem>>, vector<16x128xf32>
    %c0_2 = arith.constant 0 : index
    %c0_3 = arith.constant 0 : index
    %4 = vector.load %arg3[%c0_2, %c0_3] : memref<16x640xbf16, #tpu.memory_space<vmem>>, vector<16x640xbf16>
    %c0_4 = arith.constant 0 : index
    %c0_5 = arith.constant 0 : index
    %5 = vector.load %arg4[%c0_4, %c0_5] : memref<640x128xbf16, #tpu.memory_space<vmem>>, vector<640x128xbf16>
    %cst = arith.constant dense<0.000000e+00> : vector<16x128xf32>
    %6 = tpu.matmul %4, %5, %cst {dimension_numbers = #tpu.dot_dimension_numbers<[1], [0], [0], [1], [0, 0, 1, 1], [], []>} : vector<16x640xbf16>, vector<640x128xbf16>, vector<16x128xf32> -> vector<16x128xf32>
    %7 = arith.addf %3, %6 : vector<16x128xf32>
    %c0_6 = arith.constant 0 : index
    %c0_7 = arith.constant 0 : index
    %8 = vector.load %arg7[%c0_6, %c0_7] : memref<16x128xf32, #tpu.memory_space<vmem>>, vector<16x128xf32>
    tpu.vector_store %arg7[%c0_6, %c0_7], %7 {strides = array<i32>} : memref<16x128xf32, #tpu.memory_space<vmem>>, vector<16x128xf32>,
    %c0_i32_8 = arith.constant 0 : i32
    %9 = arith.cmpi eq, %arg2, %c0_i32_8 : i32
    %10 = arith.extui %9 : i1 to i32
    %c0_i32_9 = arith.constant 0 : i32
    %11 = arith.cmpi ne, %10, %c0_i32_9 : i32
    scf.if %11 {
      %c0_10 = arith.constant 0 : index
      %c0_11 = arith.constant 0 : index
      %12 = vector.load %arg7[%c0_10, %c0_11] : memref<16x128xf32, #tpu.memory_space<vmem>>, vector<16x128xf32>
      %c0_12 = arith.constant 0 : index
      %c0_13 = arith.constant 0 : index
      %13 = vector.load %arg5[%c0_12, %c0_13] : memref<1x128xf32, #tpu.memory_space<vmem>>, vector<1x128xf32>
      %14 = vector.broadcast %13 : vector<1x128xf32> to vector<16x128xf32>
      %15 = arith.addf %12, %14 : vector<16x128xf32>
      %cst_14 = arith.constant 0.000000e+00 : f32
      %16 = vector.broadcast %cst_14 : f32 to vector<16x128xf32>
      %17 = arith.cmpf oge, %15, %16 : vector<16x128xf32>
      %cst_15 = arith.constant 1.000000e-01 : f32
      %18 = vector.broadcast %cst_15 : f32 to vector<16x128xf32>
      %19 = arith.mulf %18, %15 : vector<16x128xf32>
      %20 = arith.select %17, %15, %19 : vector<16x128xi1>, vector<16x128xf32>
      %c0_16 = arith.constant 0 : index
      %c0_17 = arith.constant 0 : index
      %21 = vector.load %arg6[%c0_16, %c0_17] : memref<16x128xf32, #tpu.memory_space<vmem>>, vector<16x128xf32>
      tpu.vector_store %arg6[%c0_16, %c0_17], %20 {strides = array<i32>} : memref<16x128xf32, #tpu.memory_space<vmem>>, vector<16x128xf32>,
    } else {
    }
    return
  }
  func.func @transform_0(%arg0: i32, %arg1: i32, %arg2: i32) -> (i32, i32) {
    %c0_i32 = arith.constant 0 : i32
    return %arg0, %arg2 : i32, i32
  }
  func.func @transform_1(%arg0: i32, %arg1: i32, %arg2: i32) -> (i32, i32) {
    %c0_i32 = arith.constant 0 : i32
    return %arg2, %arg1 : i32, i32
  }
  func.func @transform_2(%arg0: i32, %arg1: i32, %arg2: i32) -> (i32, i32) {
    %c0_i32 = arith.constant 0 : i32
    %c0_i32_0 = arith.constant 0 : i32
    return %c0_i32, %arg1 : i32, i32
  }
  func.func @transform_3(%arg0: i32, %arg1: i32, %arg2: i32) -> (i32, i32) {
    %c0_i32 = arith.constant 0 : i32
    return %arg0, %arg1 : i32, i32
  }
}

module attributes {stable_mosaic.version = 11 : i64} {
  func.func @_mm_bias_act_kernel(%arg0: i32, %arg1: i32, %arg2: i32, %arg3: memref<16x384xbf16, #tpu.memory_space<vmem>>, %arg4: memref<384x128xbf16, #tpu.memory_space<vmem>>, %arg5: memref<1x128xf32, #tpu.memory_space<vmem>>, %arg6: memref<16x128xf32, #tpu.memory_space<vmem>>, %arg7: memref<16x128xf32, #tpu.memory_space<vmem>>) attributes {dimension_semantics = [#tpu.dimension_semantics<parallel>, #tpu.dimension_semantics<parallel>, #tpu.dimension_semantics<arbitrary>], iteration_bounds = array<i64: 1, 1, 1>, scalar_prefetch = 0 : i64, scratch_operands = 1 : i64, tpu.core_type = #tpu.core_type<tc>, window_params = [{transform_indices = @transform_0, window_bounds = array<i64: 16, 384>}, {transform_indices = @transform_1, window_bounds = array<i64: 384, 128>}, {transform_indices = @transform_2, window_bounds = array<i64: 1, 128>}, {transform_indices = @transform_3, window_bounds = array<i64: 16, 128>}]} {
    %c0_i32 = arith.constant 0 : i32
    %0 = arith.cmpi eq, %arg2, %c0_i32 : i32
    %1 = arith.extui %0 : i1 to i32
    %c0_i32_0 = arith.constant 0 : i32
    %2 = arith.cmpi ne, %1, %c0_i32_0 : i32
    scf.if %2 {
      %cst_10 = arith.constant 0.000000e+00 : f32
      %12 = vector.broadcast %cst_10 : f32 to vector<16x128xf32>
      %c0_11 = arith.constant 0 : index
      %c0_12 = arith.constant 0 : index
      %13 = vector.load %arg7[%c0_11, %c0_12] : memref<16x128xf32, #tpu.memory_space<vmem>>, vector<16x128xf32>
      tpu.vector_store %arg7[%c0_11, %c0_12], %12 {strides = array<i32>} : memref<16x128xf32, #tpu.memory_space<vmem>>, vector<16x128xf32>,
    } else {
    }
    %c0 = arith.constant 0 : index
    %c0_1 = arith.constant 0 : index
    %3 = vector.load %arg7[%c0, %c0_1] : memref<16x128xf32, #tpu.memory_space<vmem>>, vector<16x128xf32>
    %c0_2 = arith.constant 0 : index
    %c0_3 = arith.constant 0 : index
    %4 = vector.load %arg3[%c0_2, %c0_3] : memref<16x384xbf16, #tpu.memory_space<vmem>>, vector<16x384xbf16>
    %c0_4 = arith.constant 0 : index
    %c0_5 = arith.constant 0 : index
    %5 = vector.load %arg4[%c0_4, %c0_5] : memref<384x128xbf16, #tpu.memory_space<vmem>>, vector<384x128xbf16>
    %cst = arith.constant dense<0.000000e+00> : vector<16x128xf32>
    %6 = tpu.matmul %4, %5, %cst {dimension_numbers = #tpu.dot_dimension_numbers<[1], [0], [0], [1], [0, 0, 1, 1], [], []>} : vector<16x384xbf16>, vector<384x128xbf16>, vector<16x128xf32> -> vector<16x128xf32>
    %7 = arith.addf %3, %6 : vector<16x128xf32>
    %c0_6 = arith.constant 0 : index
    %c0_7 = arith.constant 0 : index
    %8 = vector.load %arg7[%c0_6, %c0_7] : memref<16x128xf32, #tpu.memory_space<vmem>>, vector<16x128xf32>
    tpu.vector_store %arg7[%c0_6, %c0_7], %7 {strides = array<i32>} : memref<16x128xf32, #tpu.memory_space<vmem>>, vector<16x128xf32>,
    %c0_i32_8 = arith.constant 0 : i32
    %9 = arith.cmpi eq, %arg2, %c0_i32_8 : i32
    %10 = arith.extui %9 : i1 to i32
    %c0_i32_9 = arith.constant 0 : i32
    %11 = arith.cmpi ne, %10, %c0_i32_9 : i32
    scf.if %11 {
      %c0_10 = arith.constant 0 : index
      %c0_11 = arith.constant 0 : index
      %12 = vector.load %arg7[%c0_10, %c0_11] : memref<16x128xf32, #tpu.memory_space<vmem>>, vector<16x128xf32>
      %c0_12 = arith.constant 0 : index
      %c0_13 = arith.constant 0 : index
      %13 = vector.load %arg5[%c0_12, %c0_13] : memref<1x128xf32, #tpu.memory_space<vmem>>, vector<1x128xf32>
      %14 = vector.broadcast %13 : vector<1x128xf32> to vector<16x128xf32>
      %15 = arith.addf %12, %14 : vector<16x128xf32>
      %c0_14 = arith.constant 0 : index
      %c0_15 = arith.constant 0 : index
      %16 = vector.load %arg6[%c0_14, %c0_15] : memref<16x128xf32, #tpu.memory_space<vmem>>, vector<16x128xf32>
      tpu.vector_store %arg6[%c0_14, %c0_15], %15 {strides = array<i32>} : memref<16x128xf32, #tpu.memory_space<vmem>>, vector<16x128xf32>,
    } else {
    }
    return
  }
  func.func @transform_0(%arg0: i32, %arg1: i32, %arg2: i32) -> (i32, i32) {
    %c0_i32 = arith.constant 0 : i32
    return %arg0, %arg2 : i32, i32
  }
  func.func @transform_1(%arg0: i32, %arg1: i32, %arg2: i32) -> (i32, i32) {
    %c0_i32 = arith.constant 0 : i32
    return %arg2, %arg1 : i32, i32
  }
  func.func @transform_2(%arg0: i32, %arg1: i32, %arg2: i32) -> (i32, i32) {
    %c0_i32 = arith.constant 0 : i32
    %c0_i32_0 = arith.constant 0 : i32
    return %c0_i32, %arg1 : i32, i32
  }
  func.func @transform_3(%arg0: i32, %arg1: i32, %arg2: i32) -> (i32, i32) {
    %c0_i32 = arith.constant 0 : i32
    return %arg0, %arg1 : i32, i32
  }
}

module attributes {stable_mosaic.version = 11 : i64} {
  func.func @_mm_bias_act_kernel(%arg0: i32, %arg1: i32, %arg2: i32, %arg3: memref<192x16xbf16, #tpu.memory_space<vmem>>, %arg4: memref<16x128xbf16, #tpu.memory_space<vmem>>, %arg5: memref<1x128xf32, #tpu.memory_space<vmem>>, %arg6: memref<192x128xf32, #tpu.memory_space<vmem>>, %arg7: memref<192x128xf32, #tpu.memory_space<vmem>>) attributes {dimension_semantics = [#tpu.dimension_semantics<parallel>, #tpu.dimension_semantics<parallel>, #tpu.dimension_semantics<arbitrary>], iteration_bounds = array<i64: 1, 1, 1>, scalar_prefetch = 0 : i64, scratch_operands = 1 : i64, tpu.core_type = #tpu.core_type<tc>, window_params = [{transform_indices = @transform_0, window_bounds = array<i64: 192, 16>}, {transform_indices = @transform_1, window_bounds = array<i64: 16, 128>}, {transform_indices = @transform_2, window_bounds = array<i64: 1, 128>}, {transform_indices = @transform_3, window_bounds = array<i64: 192, 128>}]} {
    %c0_i32 = arith.constant 0 : i32
    %0 = arith.cmpi eq, %arg2, %c0_i32 : i32
    %1 = arith.extui %0 : i1 to i32
    %c0_i32_0 = arith.constant 0 : i32
    %2 = arith.cmpi ne, %1, %c0_i32_0 : i32
    scf.if %2 {
      %cst_10 = arith.constant 0.000000e+00 : f32
      %12 = vector.broadcast %cst_10 : f32 to vector<192x128xf32>
      %c0_11 = arith.constant 0 : index
      %c0_12 = arith.constant 0 : index
      %13 = vector.load %arg7[%c0_11, %c0_12] : memref<192x128xf32, #tpu.memory_space<vmem>>, vector<192x128xf32>
      tpu.vector_store %arg7[%c0_11, %c0_12], %12 {strides = array<i32>} : memref<192x128xf32, #tpu.memory_space<vmem>>, vector<192x128xf32>,
    } else {
    }
    %c0 = arith.constant 0 : index
    %c0_1 = arith.constant 0 : index
    %3 = vector.load %arg7[%c0, %c0_1] : memref<192x128xf32, #tpu.memory_space<vmem>>, vector<192x128xf32>
    %c0_2 = arith.constant 0 : index
    %c0_3 = arith.constant 0 : index
    %4 = vector.load %arg3[%c0_2, %c0_3] : memref<192x16xbf16, #tpu.memory_space<vmem>>, vector<192x16xbf16>
    %c0_4 = arith.constant 0 : index
    %c0_5 = arith.constant 0 : index
    %5 = vector.load %arg4[%c0_4, %c0_5] : memref<16x128xbf16, #tpu.memory_space<vmem>>, vector<16x128xbf16>
    %cst = arith.constant dense<0.000000e+00> : vector<192x128xf32>
    %6 = tpu.matmul %4, %5, %cst {dimension_numbers = #tpu.dot_dimension_numbers<[1], [0], [0], [1], [0, 0, 1, 1], [], []>} : vector<192x16xbf16>, vector<16x128xbf16>, vector<192x128xf32> -> vector<192x128xf32>
    %7 = arith.addf %3, %6 : vector<192x128xf32>
    %c0_6 = arith.constant 0 : index
    %c0_7 = arith.constant 0 : index
    %8 = vector.load %arg7[%c0_6, %c0_7] : memref<192x128xf32, #tpu.memory_space<vmem>>, vector<192x128xf32>
    tpu.vector_store %arg7[%c0_6, %c0_7], %7 {strides = array<i32>} : memref<192x128xf32, #tpu.memory_space<vmem>>, vector<192x128xf32>,
    %c0_i32_8 = arith.constant 0 : i32
    %9 = arith.cmpi eq, %arg2, %c0_i32_8 : i32
    %10 = arith.extui %9 : i1 to i32
    %c0_i32_9 = arith.constant 0 : i32
    %11 = arith.cmpi ne, %10, %c0_i32_9 : i32
    scf.if %11 {
      %c0_10 = arith.constant 0 : index
      %c0_11 = arith.constant 0 : index
      %12 = vector.load %arg7[%c0_10, %c0_11] : memref<192x128xf32, #tpu.memory_space<vmem>>, vector<192x128xf32>
      %c0_12 = arith.constant 0 : index
      %c0_13 = arith.constant 0 : index
      %13 = vector.load %arg5[%c0_12, %c0_13] : memref<1x128xf32, #tpu.memory_space<vmem>>, vector<1x128xf32>
      %14 = vector.broadcast %13 : vector<1x128xf32> to vector<192x128xf32>
      %15 = arith.addf %12, %14 : vector<192x128xf32>
      %cst_14 = arith.constant 0.000000e+00 : f32
      %16 = vector.broadcast %cst_14 : f32 to vector<192x128xf32>
      %17 = arith.cmpf oge, %15, %16 : vector<192x128xf32>
      %cst_15 = arith.constant 1.000000e-01 : f32
      %18 = vector.broadcast %cst_15 : f32 to vector<192x128xf32>
      %19 = arith.mulf %18, %15 : vector<192x128xf32>
      %20 = arith.select %17, %15, %19 : vector<192x128xi1>, vector<192x128xf32>
      %c0_16 = arith.constant 0 : index
      %c0_17 = arith.constant 0 : index
      %21 = vector.load %arg6[%c0_16, %c0_17] : memref<192x128xf32, #tpu.memory_space<vmem>>, vector<192x128xf32>
      tpu.vector_store %arg6[%c0_16, %c0_17], %20 {strides = array<i32>} : memref<192x128xf32, #tpu.memory_space<vmem>>, vector<192x128xf32>,
    } else {
    }
    return
  }
  func.func @transform_0(%arg0: i32, %arg1: i32, %arg2: i32) -> (i32, i32) {
    %c0_i32 = arith.constant 0 : i32
    return %arg0, %arg2 : i32, i32
  }
  func.func @transform_1(%arg0: i32, %arg1: i32, %arg2: i32) -> (i32, i32) {
    %c0_i32 = arith.constant 0 : i32
    return %arg2, %arg1 : i32, i32
  }
  func.func @transform_2(%arg0: i32, %arg1: i32, %arg2: i32) -> (i32, i32) {
    %c0_i32 = arith.constant 0 : i32
    %c0_i32_0 = arith.constant 0 : i32
    return %c0_i32, %arg1 : i32, i32
  }
  func.func @transform_3(%arg0: i32, %arg1: i32, %arg2: i32) -> (i32, i32) {
    %c0_i32 = arith.constant 0 : i32
    return %arg0, %arg1 : i32, i32
  }
}

module attributes {stable_mosaic.version = 11 : i64} {
  func.func @_mm_bias_act_kernel(%arg0: i32, %arg1: i32, %arg2: i32, %arg3: memref<80x160xbf16, #tpu.memory_space<vmem>>, %arg4: memref<160x128xbf16, #tpu.memory_space<vmem>>, %arg5: memref<1x128xf32, #tpu.memory_space<vmem>>, %arg6: memref<80x128xf32, #tpu.memory_space<vmem>>, %arg7: memref<80x128xf32, #tpu.memory_space<vmem>>) attributes {dimension_semantics = [#tpu.dimension_semantics<parallel>, #tpu.dimension_semantics<parallel>, #tpu.dimension_semantics<arbitrary>], iteration_bounds = array<i64: 1, 1, 1>, scalar_prefetch = 0 : i64, scratch_operands = 1 : i64, tpu.core_type = #tpu.core_type<tc>, window_params = [{transform_indices = @transform_0, window_bounds = array<i64: 80, 160>}, {transform_indices = @transform_1, window_bounds = array<i64: 160, 128>}, {transform_indices = @transform_2, window_bounds = array<i64: 1, 128>}, {transform_indices = @transform_3, window_bounds = array<i64: 80, 128>}]} {
    %c0_i32 = arith.constant 0 : i32
    %0 = arith.cmpi eq, %arg2, %c0_i32 : i32
    %1 = arith.extui %0 : i1 to i32
    %c0_i32_0 = arith.constant 0 : i32
    %2 = arith.cmpi ne, %1, %c0_i32_0 : i32
    scf.if %2 {
      %cst_10 = arith.constant 0.000000e+00 : f32
      %12 = vector.broadcast %cst_10 : f32 to vector<80x128xf32>
      %c0_11 = arith.constant 0 : index
      %c0_12 = arith.constant 0 : index
      %13 = vector.load %arg7[%c0_11, %c0_12] : memref<80x128xf32, #tpu.memory_space<vmem>>, vector<80x128xf32>
      tpu.vector_store %arg7[%c0_11, %c0_12], %12 {strides = array<i32>} : memref<80x128xf32, #tpu.memory_space<vmem>>, vector<80x128xf32>,
    } else {
    }
    %c0 = arith.constant 0 : index
    %c0_1 = arith.constant 0 : index
    %3 = vector.load %arg7[%c0, %c0_1] : memref<80x128xf32, #tpu.memory_space<vmem>>, vector<80x128xf32>
    %c0_2 = arith.constant 0 : index
    %c0_3 = arith.constant 0 : index
    %4 = vector.load %arg3[%c0_2, %c0_3] : memref<80x160xbf16, #tpu.memory_space<vmem>>, vector<80x160xbf16>
    %c0_4 = arith.constant 0 : index
    %c0_5 = arith.constant 0 : index
    %5 = vector.load %arg4[%c0_4, %c0_5] : memref<160x128xbf16, #tpu.memory_space<vmem>>, vector<160x128xbf16>
    %cst = arith.constant dense<0.000000e+00> : vector<80x128xf32>
    %6 = tpu.matmul %4, %5, %cst {dimension_numbers = #tpu.dot_dimension_numbers<[1], [0], [0], [1], [0, 0, 1, 1], [], []>} : vector<80x160xbf16>, vector<160x128xbf16>, vector<80x128xf32> -> vector<80x128xf32>
    %7 = arith.addf %3, %6 : vector<80x128xf32>
    %c0_6 = arith.constant 0 : index
    %c0_7 = arith.constant 0 : index
    %8 = vector.load %arg7[%c0_6, %c0_7] : memref<80x128xf32, #tpu.memory_space<vmem>>, vector<80x128xf32>
    tpu.vector_store %arg7[%c0_6, %c0_7], %7 {strides = array<i32>} : memref<80x128xf32, #tpu.memory_space<vmem>>, vector<80x128xf32>,
    %c0_i32_8 = arith.constant 0 : i32
    %9 = arith.cmpi eq, %arg2, %c0_i32_8 : i32
    %10 = arith.extui %9 : i1 to i32
    %c0_i32_9 = arith.constant 0 : i32
    %11 = arith.cmpi ne, %10, %c0_i32_9 : i32
    scf.if %11 {
      %c0_10 = arith.constant 0 : index
      %c0_11 = arith.constant 0 : index
      %12 = vector.load %arg7[%c0_10, %c0_11] : memref<80x128xf32, #tpu.memory_space<vmem>>, vector<80x128xf32>
      %c0_12 = arith.constant 0 : index
      %c0_13 = arith.constant 0 : index
      %13 = vector.load %arg5[%c0_12, %c0_13] : memref<1x128xf32, #tpu.memory_space<vmem>>, vector<1x128xf32>
      %14 = vector.broadcast %13 : vector<1x128xf32> to vector<80x128xf32>
      %15 = arith.addf %12, %14 : vector<80x128xf32>
      %cst_14 = arith.constant 0.000000e+00 : f32
      %16 = vector.broadcast %cst_14 : f32 to vector<80x128xf32>
      %17 = arith.cmpf oge, %15, %16 : vector<80x128xf32>
      %cst_15 = arith.constant 1.000000e-01 : f32
      %18 = vector.broadcast %cst_15 : f32 to vector<80x128xf32>
      %19 = arith.mulf %18, %15 : vector<80x128xf32>
      %20 = arith.select %17, %15, %19 : vector<80x128xi1>, vector<80x128xf32>
      %c0_16 = arith.constant 0 : index
      %c0_17 = arith.constant 0 : index
      %21 = vector.load %arg6[%c0_16, %c0_17] : memref<80x128xf32, #tpu.memory_space<vmem>>, vector<80x128xf32>
      tpu.vector_store %arg6[%c0_16, %c0_17], %20 {strides = array<i32>} : memref<80x128xf32, #tpu.memory_space<vmem>>, vector<80x128xf32>,
    } else {
    }
    return
  }
  func.func @transform_0(%arg0: i32, %arg1: i32, %arg2: i32) -> (i32, i32) {
    %c0_i32 = arith.constant 0 : i32
    return %arg0, %arg2 : i32, i32
  }
  func.func @transform_1(%arg0: i32, %arg1: i32, %arg2: i32) -> (i32, i32) {
    %c0_i32 = arith.constant 0 : i32
    return %arg2, %arg1 : i32, i32
  }
  func.func @transform_2(%arg0: i32, %arg1: i32, %arg2: i32) -> (i32, i32) {
    %c0_i32 = arith.constant 0 : i32
    %c0_i32_0 = arith.constant 0 : i32
    return %c0_i32, %arg1 : i32, i32
  }
  func.func @transform_3(%arg0: i32, %arg1: i32, %arg2: i32) -> (i32, i32) {
    %c0_i32 = arith.constant 0 : i32
    return %arg0, %arg1 : i32, i32
  }
}

module attributes {stable_mosaic.version = 11 : i64} {
  func.func @_mm_bias_act_kernel(%arg0: i32, %arg1: i32, %arg2: i32, %arg3: memref<32x384xbf16, #tpu.memory_space<vmem>>, %arg4: memref<384x128xbf16, #tpu.memory_space<vmem>>, %arg5: memref<1x128xf32, #tpu.memory_space<vmem>>, %arg6: memref<32x128xf32, #tpu.memory_space<vmem>>, %arg7: memref<32x128xf32, #tpu.memory_space<vmem>>) attributes {dimension_semantics = [#tpu.dimension_semantics<parallel>, #tpu.dimension_semantics<parallel>, #tpu.dimension_semantics<arbitrary>], iteration_bounds = array<i64: 1, 1, 1>, scalar_prefetch = 0 : i64, scratch_operands = 1 : i64, tpu.core_type = #tpu.core_type<tc>, window_params = [{transform_indices = @transform_0, window_bounds = array<i64: 32, 384>}, {transform_indices = @transform_1, window_bounds = array<i64: 384, 128>}, {transform_indices = @transform_2, window_bounds = array<i64: 1, 128>}, {transform_indices = @transform_3, window_bounds = array<i64: 32, 128>}]} {
    %c0_i32 = arith.constant 0 : i32
    %0 = arith.cmpi eq, %arg2, %c0_i32 : i32
    %1 = arith.extui %0 : i1 to i32
    %c0_i32_0 = arith.constant 0 : i32
    %2 = arith.cmpi ne, %1, %c0_i32_0 : i32
    scf.if %2 {
      %cst_10 = arith.constant 0.000000e+00 : f32
      %12 = vector.broadcast %cst_10 : f32 to vector<32x128xf32>
      %c0_11 = arith.constant 0 : index
      %c0_12 = arith.constant 0 : index
      %13 = vector.load %arg7[%c0_11, %c0_12] : memref<32x128xf32, #tpu.memory_space<vmem>>, vector<32x128xf32>
      tpu.vector_store %arg7[%c0_11, %c0_12], %12 {strides = array<i32>} : memref<32x128xf32, #tpu.memory_space<vmem>>, vector<32x128xf32>,
    } else {
    }
    %c0 = arith.constant 0 : index
    %c0_1 = arith.constant 0 : index
    %3 = vector.load %arg7[%c0, %c0_1] : memref<32x128xf32, #tpu.memory_space<vmem>>, vector<32x128xf32>
    %c0_2 = arith.constant 0 : index
    %c0_3 = arith.constant 0 : index
    %4 = vector.load %arg3[%c0_2, %c0_3] : memref<32x384xbf16, #tpu.memory_space<vmem>>, vector<32x384xbf16>
    %c0_4 = arith.constant 0 : index
    %c0_5 = arith.constant 0 : index
    %5 = vector.load %arg4[%c0_4, %c0_5] : memref<384x128xbf16, #tpu.memory_space<vmem>>, vector<384x128xbf16>
    %cst = arith.constant dense<0.000000e+00> : vector<32x128xf32>
    %6 = tpu.matmul %4, %5, %cst {dimension_numbers = #tpu.dot_dimension_numbers<[1], [0], [0], [1], [0, 0, 1, 1], [], []>} : vector<32x384xbf16>, vector<384x128xbf16>, vector<32x128xf32> -> vector<32x128xf32>
    %7 = arith.addf %3, %6 : vector<32x128xf32>
    %c0_6 = arith.constant 0 : index
    %c0_7 = arith.constant 0 : index
    %8 = vector.load %arg7[%c0_6, %c0_7] : memref<32x128xf32, #tpu.memory_space<vmem>>, vector<32x128xf32>
    tpu.vector_store %arg7[%c0_6, %c0_7], %7 {strides = array<i32>} : memref<32x128xf32, #tpu.memory_space<vmem>>, vector<32x128xf32>,
    %c0_i32_8 = arith.constant 0 : i32
    %9 = arith.cmpi eq, %arg2, %c0_i32_8 : i32
    %10 = arith.extui %9 : i1 to i32
    %c0_i32_9 = arith.constant 0 : i32
    %11 = arith.cmpi ne, %10, %c0_i32_9 : i32
    scf.if %11 {
      %c0_10 = arith.constant 0 : index
      %c0_11 = arith.constant 0 : index
      %12 = vector.load %arg7[%c0_10, %c0_11] : memref<32x128xf32, #tpu.memory_space<vmem>>, vector<32x128xf32>
      %c0_12 = arith.constant 0 : index
      %c0_13 = arith.constant 0 : index
      %13 = vector.load %arg5[%c0_12, %c0_13] : memref<1x128xf32, #tpu.memory_space<vmem>>, vector<1x128xf32>
      %14 = vector.broadcast %13 : vector<1x128xf32> to vector<32x128xf32>
      %15 = arith.addf %12, %14 : vector<32x128xf32>
      %c0_14 = arith.constant 0 : index
      %c0_15 = arith.constant 0 : index
      %16 = vector.load %arg6[%c0_14, %c0_15] : memref<32x128xf32, #tpu.memory_space<vmem>>, vector<32x128xf32>
      tpu.vector_store %arg6[%c0_14, %c0_15], %15 {strides = array<i32>} : memref<32x128xf32, #tpu.memory_space<vmem>>, vector<32x128xf32>,
    } else {
    }
    return
  }
  func.func @transform_0(%arg0: i32, %arg1: i32, %arg2: i32) -> (i32, i32) {
    %c0_i32 = arith.constant 0 : i32
    return %arg0, %arg2 : i32, i32
  }
  func.func @transform_1(%arg0: i32, %arg1: i32, %arg2: i32) -> (i32, i32) {
    %c0_i32 = arith.constant 0 : i32
    return %arg2, %arg1 : i32, i32
  }
  func.func @transform_2(%arg0: i32, %arg1: i32, %arg2: i32) -> (i32, i32) {
    %c0_i32 = arith.constant 0 : i32
    %c0_i32_0 = arith.constant 0 : i32
    return %c0_i32, %arg1 : i32, i32
  }
  func.func @transform_3(%arg0: i32, %arg1: i32, %arg2: i32) -> (i32, i32) {
    %c0_i32 = arith.constant 0 : i32
    return %arg0, %arg1 : i32, i32
  }
}

</mosaic_0001>

<bundles_post_ra>
// kernel: multi_period_discriminator_forward.30
= control target key start
LH: loop header
LB: loop body
LE: loop exit
PB: predicated region body
PF: predicated region fallthrough
CT: control target
= control target key end

     0   :  { %v591_v0 = vmov 0.0   ;;  %vm592_vm0 = vmmov 0   ;;  %vm148_vm1 = vcmask 130048   ;;  %s764_s1 = inlined_call_operand.vmem [shape: bf16[16,128], index: 1, kind: input, shape index: {}]   ;;  %s765_s0 = inlined_call_operand.vmem [shape: bf16[176,16], index: 0, kind: input, shape index: {}]   ;;  %s766_s2 = inlined_call_operand.vmem [shape: f32[1,128], index: 2, kind: input, shape index: {}]   ;;  %s767_s3 = inlined_call_operand.vmem [shape: f32[176,128], index: 3, kind: output, shape index: {}]  }
   0x1   :  { %529 = vmatprep.subr.bf16.mxu0 %v591_v0  ;;  %v579_v1 = vld [vmem:[%s764_s1] sm:$0xff]   ;;  %531 = vmatprep.mubr.msk.bf16.mxu0 %vm592_vm0, %v591_v0  ;;  %v581_v3 = vld [vmem:[%s765_s0 + $0x30] sm:$0xff]   ;;  %v582_v4 = vld [vmem:[%s765_s0 + $0x8] sm:$0xff]  }
   0x2   :  { %575 = vmatprep.subr.bf16.mxu1 %v591_v0  ;;  %v580_v2 = vld [vmem:[%s765_s0] sm:$0xff]   ;;  %555 = vmatprep.mubr.msk.bf16.mxu1 %vm592_vm0, %v591_v0  ;;  %v583_v5 = vld [vmem:[%s765_s0 + $0x38] sm:$0xff]   ;;  %v584_v6 = vld [vmem:[%s765_s0 + $0x10] sm:$0xff]  }
   0x3   :  { %530 = vmatpush3.bf16.msra.mxu0 %v579_v1  ;;  %576 = vmatpush3.bf16.msra.mxu1 %v579_v1  ;;  %v585_v7 = vld [vmem:[%s765_s0 + $0x40] sm:$0xff]   ;;  %v586_v8 = vld [vmem:[%s765_s0 + $0x18] sm:$0xff]   ;;  %v587_v9 = vld [vmem:[%s765_s0 + $0x48] sm:$0xff]  }
   0x4   :  { %v588_v10 = vld [vmem:[%s765_s0 + $0x20] sm:$0xff]   ;;  %v589_v11 = vld [vmem:[%s765_s0 + $0x50] sm:$0xff]   ;;  %v590_v12 = vld [vmem:[%s765_s0 + $0x28] sm:$0xff]  }
   0x5   :  { %v674_v13 = vld [vmem:[%s766_s2] ss:$0 sm:$0xff] }
   0x6   :  { %532 = vmatmul.mubr.msk.bf16.vlgmr.msra.gmra.mrb[0].mxu0 %vm148_vm1, %v580_v2  ;;  %556 = vmatmul.mubr.msk.bf16.vlgmr.msra.gmra.mrb[0].mxu1 %vm148_vm1, %v581_v3 }
   0x7   :  { %535 = vmatprep.mubr.msk.bf16.mxu0 %vm592_vm0, %v591_v0  ;;  %559 = vmatprep.mubr.msk.bf16.mxu1 %vm592_vm0, %v591_v0 }
   0xe   :  { %536 = vmatmul.mubr.msk.bf16.gmra.mrb[4].mxu0 %vm148_vm1, %v582_v4  ;;  %560 = vmatmul.mubr.msk.bf16.gmra.mrb[4].mxu1 %vm148_vm1, %v583_v5 }
   0xf   :  { %539 = vmatprep.mubr.msk.bf16.mxu0 %vm592_vm0, %v591_v0  ;;  %563 = vmatprep.mubr.msk.bf16.mxu1 %vm592_vm0, %v591_v0 }
  0x16   :  { %540 = vmatmul.mubr.msk.bf16.gmra.mrb[8].mxu0 %vm148_vm1, %v584_v6  ;;  %564 = vmatmul.mubr.msk.bf16.gmra.mrb[8].mxu1 %vm148_vm1, %v585_v7 }
  0x17   :  { %543 = vmatprep.mubr.msk.bf16.mxu0 %vm592_vm0, %v591_v0  ;;  %567 = vmatprep.mubr.msk.bf16.mxu1 %vm592_vm0, %v591_v0 }
  0x1e   :  { %544 = vmatmul.mubr.msk.bf16.gmra.mrb[12].mxu0 %vm148_vm1, %v586_v8  ;;  %568 = vmatmul.mubr.msk.bf16.gmra.mrb[12].mxu1 %vm148_vm1, %v587_v9 }
  0x1f   :  { %547 = vmatprep.mubr.msk.bf16.mxu0 %vm592_vm0, %v591_v0  ;;  %571 = vmatprep.mubr.msk.bf16.mxu1 %vm592_vm0, %v591_v0 }
  0x26   :  { %548 = vmatmul.mubr.msk.bf16.gmra.mrb[16].mxu0 %vm148_vm1, %v588_v10  ;;  %572 = vmatmul.mubr.msk.bf16.gmra.mrb[16].mxu1 %vm148_vm1, %v589_v11 }
  0x27   :  { %551 = vmatprep.mubr.msk.bf16.mxu0 %vm592_vm0, %v591_v0 }
  0x2e   :  { %552 = vmatmul.mubr.msk.bf16.gmra.mrb[20].mxu0 %vm148_vm1, %v590_v12 }
  0xd9   :  { %v216_v14 = vpop.f32.mrb[0].mxu0  ;;  %v264_v15 = vpop.f32.mrb[0].mxu1 }
  0xda   :  { %v379_v16 = vadd.f32 %v674_v13, %v216_v14  ;;  %v533_v17 = vpop.f32.mrb[1].mxu0  ;;  %v391_v18 = vadd.f32 %v674_v13, %v264_v15  ;;  %v557_v19 = vpop.f32.mrb[1].mxu1 }
  0xdb   :  { %v219_v20 = vpop.f32.mrb[2].mxu0  ;;  %v267_v21 = vpop.f32.mrb[2].mxu1 }
  0xdc   :  { %vm401_vm2 = vcmp.ge.f32.partialorder %v379_v16, 0.0  ;;  %v423_v22 = vmul.f32 0.1, %v379_v16  ;;  %v380_v23 = vadd.f32 %v674_v13, %v219_v20  ;;  %v534_v24 = vpop.f32.mrb[3].mxu0  ;;  %vm413_vm3 = vcmp.ge.f32.partialorder %v391_v18, 0.0  ;;  %v558_v25 = vpop.f32.mrb[3].mxu1 }
  0xdd   :  { %v435_v26 = vmul.f32 0.1, %v391_v18  ;;  %v392_v27 = vadd.f32 %v674_v13, %v267_v21 }
  0xde   :  { %v445_v28 = vsel %vm401_vm2, %v379_v16, %v423_v22  ;;  %vm402_vm4 = vcmp.ge.f32.partialorder %v380_v23, 0.0  ;;  %v424_v29 = vmul.f32 0.1, %v380_v23 }
  0xdf   :  { %467 = vst [vmem:[%s767_s3] sm:$0xff] %v445_v28  ;;  %v457_v30 = vsel %vm413_vm3, %v391_v18, %v435_v26  ;;  %vm414_vm5 = vcmp.ge.f32.partialorder %v392_v27, 0.0  ;;  %v436_v31 = vmul.f32 0.1, %v392_v27 }
  0xe0   :  { %v446_v32 = vsel %vm402_vm4, %v380_v23, %v424_v29  ;;  %479 = vst [vmem:[%s767_s3 + $0x60] sm:$0xff] %v457_v30 }
  0xe1   :  { %468 = vst [vmem:[%s767_s3 + $0x8] sm:$0xff] %v446_v32  ;;  %v458_v33 = vsel %vm414_vm5, %v392_v27, %v436_v31  ;;  %v224_v34 = vpop.f32.mrb[4].mxu0  ;;  %v272_v35 = vpop.f32.mrb[4].mxu1 }
  0xe2   :  { %480 = vst [vmem:[%s767_s3 + $0x68] sm:$0xff] %v458_v33  ;;  %v381_v36 = vadd.f32 %v674_v13, %v224_v34  ;;  %v537_v37 = vpop.f32.mrb[5].mxu0  ;;  %v393_v38 = vadd.f32 %v674_v13, %v272_v35  ;;  %v561_v39 = vpop.f32.mrb[5].mxu1 }
  0xe3   :  { %v227_v40 = vpop.f32.mrb[6].mxu0  ;;  %v275_v41 = vpop.f32.mrb[6].mxu1 }
  0xe4   :  { %vm403_vm6 = vcmp.ge.f32.partialorder %v381_v36, 0.0  ;;  %v425_v42 = vmul.f32 0.1, %v381_v36  ;;  %v382_v43 = vadd.f32 %v674_v13, %v227_v40  ;;  %v538_v44 = vpop.f32.mrb[7].mxu0  ;;  %vm415_vm7 = vcmp.ge.f32.partialorder %v393_v38, 0.0  ;;  %v562_v45 = vpop.f32.mrb[7].mxu1 }
  0xe5   :  { %v437_v46 = vmul.f32 0.1, %v393_v38  ;;  %v394_v47 = vadd.f32 %v674_v13, %v275_v41 }
  0xe6   :  { %v447_v48 = vsel %vm403_vm6, %v381_v36, %v425_v42  ;;  %vm404_vm8 = vcmp.ge.f32.partialorder %v382_v43, 0.0  ;;  %v426_v49 = vmul.f32 0.1, %v382_v43 }
  0xe7   :  { %469 = vst [vmem:[%s767_s3 + $0x10] sm:$0xff] %v447_v48  ;;  %v459_v50 = vsel %vm415_vm7, %v393_v38, %v437_v46  ;;  %vm416_vm9 = vcmp.ge.f32.partialorder %v394_v47, 0.0  ;;  %v438_v51 = vmul.f32 0.1, %v394_v47 }
  0xe8   :  { %v448_v52 = vsel %vm404_vm8, %v382_v43, %v426_v49  ;;  %481 = vst [vmem:[%s767_s3 + $0x70] sm:$0xff] %v459_v50 }
  0xe9   :  { %470 = vst [vmem:[%s767_s3 + $0x18] sm:$0xff] %v448_v52  ;;  %v460_v53 = vsel %vm416_vm9, %v394_v47, %v438_v51  ;;  %v232_v54 = vpop.f32.mrb[8].mxu0  ;;  %v280_v55 = vpop.f32.mrb[8].mxu1 }
  0xea   :  { %482 = vst [vmem:[%s767_s3 + $0x78] sm:$0xff] %v460_v53  ;;  %v383_v56 = vadd.f32 %v674_v13, %v232_v54  ;;  %v541_v57 = vpop.f32.mrb[9].mxu0  ;;  %v395_v58 = vadd.f32 %v674_v13, %v280_v55  ;;  %v565_v59 = vpop.f32.mrb[9].mxu1 }
  0xeb   :  { %v235_v60 = vpop.f32.mrb[10].mxu0  ;;  %v283_v61 = vpop.f32.mrb[10].mxu1 }
  0xec   :  { %vm405_vm10 = vcmp.ge.f32.partialorder %v383_v56, 0.0  ;;  %v427_v62 = vmul.f32 0.1, %v383_v56  ;;  %v384_v63 = vadd.f32 %v674_v13, %v235_v60  ;;  %v542_v0 = vpop.f32.mrb[11].mxu0  ;;  %vm417_vm11 = vcmp.ge.f32.partialorder %v395_v58, 0.0  ;;  %v566_v1 = vpop.f32.mrb[11].mxu1 }
  0xed   :  { %v439_v2 = vmul.f32 0.1, %v395_v58  ;;  %v396_v3 = vadd.f32 %v674_v13, %v283_v61 }
  0xee   :  { %v449_v4 = vsel %vm405_vm10, %v383_v56, %v427_v62  ;;  %vm406_vm12 = vcmp.ge.f32.partialorder %v384_v63, 0.0  ;;  %v428_v5 = vmul.f32 0.1, %v384_v63 }
  0xef   :  { %471 = vst [vmem:[%s767_s3 + $0x20] sm:$0xff] %v449_v4  ;;  %v461_v6 = vsel %vm417_vm11, %v395_v58, %v439_v2  ;;  %vm418_vm13 = vcmp.ge.f32.partialorder %v396_v3, 0.0  ;;  %v440_v7 = vmul.f32 0.1, %v396_v3 }
  0xf0   :  { %v450_v8 = vsel %vm406_vm12, %v384_v63, %v428_v5  ;;  %483 = vst [vmem:[%s767_s3 + $0x80] sm:$0xff] %v461_v6 }
  0xf1   :  { %472 = vst [vmem:[%s767_s3 + $0x28] sm:$0xff] %v450_v8  ;;  %v462_v9 = vsel %vm418_vm13, %v396_v3, %v440_v7  ;;  %v240_v10 = vpop.f32.mrb[12].mxu0  ;;  %v288_v11 = vpop.f32.mrb[12].mxu1 }
  0xf2   :  { %484 = vst [vmem:[%s767_s3 + $0x88] sm:$0xff] %v462_v9  ;;  %v385_v12 = vadd.f32 %v674_v13, %v240_v10  ;;  %v545_v14 = vpop.f32.mrb[13].mxu0  ;;  %v397_v15 = vadd.f32 %v674_v13, %v288_v11  ;;  %v569_v16 = vpop.f32.mrb[13].mxu1 }
  0xf3   :  { %v243_v17 = vpop.f32.mrb[14].mxu0  ;;  %v291_v18 = vpop.f32.mrb[14].mxu1 }
  0xf4   :  { %vm407_vm14 = vcmp.ge.f32.partialorder %v385_v12, 0.0  ;;  %v429_v19 = vmul.f32 0.1, %v385_v12  ;;  %v386_v20 = vadd.f32 %v674_v13, %v243_v17  ;;  %v546_v21 = vpop.f32.mrb[15].mxu0  ;;  %vm419_vm15 = vcmp.ge.f32.partialorder %v397_v15, 0.0  ;;  %v570_v22 = vpop.f32.mrb[15].mxu1 }
  0xf5   :  { %v441_v23 = vmul.f32 0.1, %v397_v15  ;;  %v398_v24 = vadd.f32 %v674_v13, %v291_v18 }
  0xf6   :  { %v451_v25 = vsel %vm407_vm14, %v385_v12, %v429_v19  ;;  %vm408_vm0 = vcmp.ge.f32.partialorder %v386_v20, 0.0  ;;  %v430_v26 = vmul.f32 0.1, %v386_v20 }
  0xf7   :  { %473 = vst [vmem:[%s767_s3 + $0x30] sm:$0xff] %v451_v25  ;;  %v463_v27 = vsel %vm419_vm15, %v397_v15, %v441_v23  ;;  %vm420_vm1 = vcmp.ge.f32.partialorder %v398_v24, 0.0  ;;  %v442_v28 = vmul.f32 0.1, %v398_v24 }
  0xf8   :  { %v452_v29 = vsel %vm408_vm0, %v386_v20, %v430_v26  ;;  %485 = vst [vmem:[%s767_s3 + $0x90] sm:$0xff] %v463_v27 }
  0xf9   :  { %474 = vst [vmem:[%s767_s3 + $0x38] sm:$0xff] %v452_v29  ;;  %v464_v30 = vsel %vm420_vm1, %v398_v24, %v442_v28  ;;  %v248_v31 = vpop.f32.mrb[16].mxu0  ;;  %v296_v32 = vpop.f32.mrb[16].mxu1 }
  0xfa   :  { %486 = vst [vmem:[%s767_s3 + $0x98] sm:$0xff] %v464_v30  ;;  %v387_v33 = vadd.f32 %v674_v13, %v248_v31  ;;  %v549_v34 = vpop.f32.mrb[17].mxu0  ;;  %v399_v35 = vadd.f32 %v674_v13, %v296_v32  ;;  %v573_v36 = vpop.f32.mrb[17].mxu1 }
  0xfb   :  { %v251_v37 = vpop.f32.mrb[18].mxu0  ;;  %v299_v38 = vpop.f32.mrb[18].mxu1 }
  0xfc   :  { %vm409_vm2 = vcmp.ge.f32.partialorder %v387_v33, 0.0  ;;  %v431_v39 = vmul.f32 0.1, %v387_v33  ;;  %v388_v40 = vadd.f32 %v674_v13, %v251_v37  ;;  %v550_v41 = vpop.f32.mrb[19].mxu0  ;;  %vm421_vm3 = vcmp.ge.f32.partialorder %v399_v35, 0.0  ;;  %v574_v42 = vpop.f32.mrb[19].mxu1 }
  0xfd   :  { %v443_v43 = vmul.f32 0.1, %v399_v35  ;;  %v400_v44 = vadd.f32 %v674_v13, %v299_v38 }
  0xfe   :  { %v453_v45 = vsel %vm409_vm2, %v387_v33, %v431_v39  ;;  %vm410_vm4 = vcmp.ge.f32.partialorder %v388_v40, 0.0  ;;  %v432_v46 = vmul.f32 0.1, %v388_v40 }
  0xff   :  { %475 = vst [vmem:[%s767_s3 + $0x40] sm:$0xff] %v453_v45  ;;  %v465_v47 = vsel %vm421_vm3, %v399_v35, %v443_v43  ;;  %vm422_vm5 = vcmp.ge.f32.partialorder %v400_v44, 0.0  ;;  %v444_v48 = vmul.f32 0.1, %v400_v44 }
 0x100   :  { %v454_v49 = vsel %vm410_vm4, %v388_v40, %v432_v46  ;;  %487 = vst [vmem:[%s767_s3 + $0xa0] sm:$0xff] %v465_v47 }
 0x101   :  { %476 = vst [vmem:[%s767_s3 + $0x48] sm:$0xff] %v454_v49  ;;  %v466_v50 = vsel %vm422_vm5, %v400_v44, %v444_v48  ;;  %v256_v51 = vpop.f32.mrb[20].mxu0 }
 0x102   :  { %488 = vst [vmem:[%s767_s3 + $0xa8] sm:$0xff] %v466_v50  ;;  %v389_v52 = vadd.f32 %v674_v13, %v256_v51  ;;  %v553_v53 = vpop.f32.mrb[21].mxu0 }
 0x103   :  { %v259_v54 = vpop.f32.mrb[22].mxu0 }
 0x104   :  { %vm411_vm6 = vcmp.ge.f32.partialorder %v389_v52, 0.0  ;;  %v433_v55 = vmul.f32 0.1, %v389_v52  ;;  %v390_v56 = vadd.f32 %v674_v13, %v259_v54  ;;  %v554_v57 = vpop.f32.mrb[23].mxu0 }
 0x106   :  { %v455_v58 = vsel %vm411_vm6, %v389_v52, %v433_v55  ;;  %vm412_vm7 = vcmp.ge.f32.partialorder %v390_v56, 0.0  ;;  %v434_v59 = vmul.f32 0.1, %v390_v56 }
 0x107   :  { %477 = vst [vmem:[%s767_s3 + $0x50] sm:$0xff] %v455_v58 }
 0x108   :  { %v456_v60 = vsel %vm412_vm7, %v390_v56, %v434_v59 }
 0x109   :  { %478 = vst [vmem:[%s767_s3 + $0x58] sm:$0xff] %v456_v60 }

// kernel: multi_period_discriminator_forward.31
= control target key start
LH: loop header
LB: loop body
LE: loop exit
PB: predicated region body
PF: predicated region fallthrough
CT: control target
= control target key end

     0   :  { %v381_v0 = vmov 0   ;;  %vm159_vm0 = vcmask 261120   ;;  %s487_s1 = inlined_call_operand.vmem [shape: bf16[160,128], index: 1, kind: input, shape index: {}]   ;;  %s488_s0 = inlined_call_operand.vmem [shape: bf16[64,160], index: 0, kind: input, shape index: {}]   ;;  %s489_s2 = inlined_call_operand.vmem [shape: f32[1,128], index: 2, kind: input, shape index: {}]   ;;  %s490_s3 = inlined_call_operand.vmem [shape: f32[64,128], index: 3, kind: output, shape index: {}]  }
   0x1   :  { %172 = vmatprep.subr.bf16.mxu0 %v381_v0  ;;  %338 = vmatprep.subr.bf16.mxu1 %v381_v0  ;;  %v359_v1 = vld [vmem:[%s487_s1] sm:$0xff]   ;;  %v360_v2 = vld [vmem:[%s487_s1 + $0x8] sm:$0xff]   ;;  %v361_v3 = vld [vmem:[%s487_s1 + $0x10] sm:$0xff]  }
   0x2   :  { %173 = vmatpush1.bf16.msra.mxu0 %v359_v1  ;;  %348 = vmatpush1.bf16.msra.mxu1 %v359_v1  ;;  %v362_v4 = vld [vmem:[%s487_s1 + $0x18] sm:$0xff]   ;;  %v371_v5 = vld [vmem:[%s488_s0 + $0x4] ss:$8 sps:$4 sm:$0xff]   ;;  %v365_v9 = vld [vmem:[%s487_s1 + $0x30] sm:$0xff]  }
   0x3   :  { %174 = vmatprep.subr.bf16.mxu0 %v381_v0  ;;  %339 = vmatprep.subr.bf16.mxu1 %v381_v0  ;;  %v374_v6 = vld [vmem:[%s488_s0 + $0x24] ss:$8 sps:$4 sm:$0xff]   ;;  %v366_v10 = vld [vmem:[%s487_s1 + $0x38] sm:$0xff]   ;;  %v369_v13 = vld [vmem:[%s488_s0] ss:$8 sps:$4 sm:$0xff]  }
   0x4   :  { %333 = vmatprep.mubr.msk.bf16.mxu0 %vm159_vm0, %v371_v5  ;;  %v363_v7 = vld [vmem:[%s487_s1 + $0x20] sm:$0xff]   ;;  %335 = vmatprep.mubr.msk.bf16.mxu1 %vm159_vm0, %v374_v6  ;;  %v364_v8 = vld [vmem:[%s487_s1 + $0x28] sm:$0xff]   ;;  %v375_v15 = vld [vmem:[%s488_s0 + $0x14] ss:$8 sps:$4 sm:$0xff]  }
   0x5   :  { %v367_v11 = vld [vmem:[%s487_s1 + $0x40] sm:$0xff]   ;;  %v368_v12 = vld [vmem:[%s487_s1 + $0x48] sm:$0xff]   ;;  %v377_v16 = vld [vmem:[%s488_s0 + $0x34] ss:$8 sps:$4 sm:$0xff]  }
   0x6   :  { %175 = vmatpush1.bf16.msra.mxu0 %v360_v2  ;;  %349 = vmatpush1.bf16.msra.mxu1 %v360_v2  ;;  %v372_v14 = vld [vmem:[%s488_s0 + $0x20] ss:$8 sps:$4 sm:$0xff]   ;;  %v379_v17 = vld [vmem:[%s488_s0 + $0x10] ss:$8 sps:$4 sm:$0xff]  }
   0x7   :  { %176 = vmatprep.subr.bf16.mxu0 %v381_v0  ;;  %340 = vmatprep.subr.bf16.mxu1 %v381_v0  ;;  %v380_v18 = vld [vmem:[%s488_s0 + $0x30] ss:$8 sps:$4 sm:$0xff]   ;;  %v337_v19 = vld [vmem:[%s489_s2] ss:$0 sm:$0xff] }
   0xa   :  { %177 = vmatpush1.bf16.msra.mxu0 %v361_v3  ;;  %350 = vmatpush1.bf16.msra.mxu1 %v361_v3 }
   0xb   :  { %178 = vmatprep.subr.bf16.mxu0 %v381_v0  ;;  %341 = vmatprep.subr.bf16.mxu1 %v381_v0 }
   0xe   :  { %179 = vmatpush1.bf16.msra.mxu0 %v362_v4  ;;  %351 = vmatpush1.bf16.msra.mxu1 %v362_v4 }
   0xf   :  { %180 = vmatprep.subr.bf16.mxu0 %v381_v0  ;;  %342 = vmatprep.subr.bf16.mxu1 %v381_v0 }
  0x12   :  { %181 = vmatpush1.bf16.msra.mxu0 %v363_v7  ;;  %352 = vmatpush1.bf16.msra.mxu1 %v363_v7 }
  0x13   :  { %182 = vmatprep.subr.bf16.mxu0 %v381_v0  ;;  %343 = vmatprep.subr.bf16.mxu1 %v381_v0 }
  0x16   :  { %183 = vmatpush1.bf16.msra.mxu0 %v364_v8  ;;  %353 = vmatpush1.bf16.msra.mxu1 %v364_v8 }
  0x17   :  { %184 = vmatprep.subr.bf16.mxu0 %v381_v0  ;;  %344 = vmatprep.subr.bf16.mxu1 %v381_v0 }
  0x1a   :  { %185 = vmatpush1.bf16.msra.mxu0 %v365_v9  ;;  %354 = vmatpush1.bf16.msra.mxu1 %v365_v9 }
  0x1b   :  { %186 = vmatprep.subr.bf16.mxu0 %v381_v0  ;;  %345 = vmatprep.subr.bf16.mxu1 %v381_v0 }
  0x1e   :  { %187 = vmatpush1.bf16.msra.mxu0 %v366_v10  ;;  %355 = vmatpush1.bf16.msra.mxu1 %v366_v10 }
  0x1f   :  { %188 = vmatprep.subr.bf16.mxu0 %v381_v0  ;;  %346 = vmatprep.subr.bf16.mxu1 %v381_v0 }
  0x22   :  { %189 = vmatpush1.bf16.msra.mxu0 %v367_v11  ;;  %356 = vmatpush1.bf16.msra.mxu1 %v367_v11 }
  0x23   :  { %190 = vmatprep.subr.bf16.mxu0 %v381_v0  ;;  %347 = vmatprep.subr.bf16.mxu1 %v381_v0 }
  0x26   :  { %191 = vmatpush1.bf16.msra.mxu0 %v368_v12  ;;  %357 = vmatpush1.bf16.msra.mxu1 %v368_v12 }
  0x29   :  { %205 = vmatmul.mubr.bf16.vlgmr.msra.gmra.mrb[0].mxu0 %v369_v13  ;;  %221 = vmatmul.mubr.bf16.vlgmr.msra.gmra.mrb[0].mxu1 %v372_v14 }
  0x2a   :  { %334 = vmatprep.mubr.msk.bf16.mxu0 %vm159_vm0, %v375_v15  ;;  %336 = vmatprep.mubr.msk.bf16.mxu1 %vm159_vm0, %v377_v16 }
  0x31   :  { %213 = vmatmul.mubr.bf16.gmra.mrb[4].mxu0 %v379_v17  ;;  %229 = vmatmul.mubr.bf16.gmra.mrb[4].mxu1 %v380_v18 }
  0xfc   :  { %v206_v20 = vpop.f32.mrb[0].mxu0  ;;  %v222_v21 = vpop.f32.mrb[0].mxu1 }
  0xfd   :  { %v271_v22 = vadd.f32 %v337_v19, %v206_v20  ;;  %v275_v23 = vadd.f32 %v337_v19, %v222_v21  ;;  %v208_v24 = vpop.f32.mrb[1].mxu0  ;;  %v224_v25 = vpop.f32.mrb[1].mxu1 }
  0xfe   :  { %v209_v26 = vpop.f32.mrb[2].mxu0  ;;  %v225_v27 = vpop.f32.mrb[2].mxu1 }
  0xff   :  { %vm279_vm1 = vcmp.ge.f32.partialorder %v271_v22, 0.0  ;;  %v287_v28 = vmul.f32 0.1, %v271_v22  ;;  %vm283_vm2 = vcmp.ge.f32.partialorder %v275_v23, 0.0  ;;  %v291_v29 = vmul.f32 0.1, %v275_v23 }
 0x100   :  { %v272_v30 = vadd.f32 %v337_v19, %v209_v26  ;;  %v276_v31 = vadd.f32 %v337_v19, %v225_v27  ;;  %v211_v32 = vpop.f32.mrb[3].mxu0  ;;  %v227_v33 = vpop.f32.mrb[3].mxu1 }
 0x101   :  { %v295_v34 = vsel %vm279_vm1, %v271_v22, %v287_v28  ;;  %v299_v35 = vsel %vm283_vm2, %v275_v23, %v291_v29 }
 0x102   :  { %303 = vst [vmem:[%s490_s3] sm:$0xff] %v295_v34  ;;  %307 = vst [vmem:[%s490_s3 + $0x20] sm:$0xff] %v299_v35  ;;  %vm280_vm3 = vcmp.ge.f32.partialorder %v272_v30, 0.0  ;;  %v288_v36 = vmul.f32 0.1, %v272_v30  ;;  %vm284_vm4 = vcmp.ge.f32.partialorder %v276_v31, 0.0 }
 0x103   :  { %v292_v37 = vmul.f32 0.1, %v276_v31 }
 0x104   :  { %v296_v38 = vsel %vm280_vm3, %v272_v30, %v288_v36  ;;  %v214_v40 = vpop.f32.mrb[4].mxu0  ;;  %v230_v41 = vpop.f32.mrb[4].mxu1 }
 0x105   :  { %v300_v39 = vsel %vm284_vm4, %v276_v31, %v292_v37  ;;  %304 = vst [vmem:[%s490_s3 + $0x8] sm:$0xff] %v296_v38  ;;  %v273_v42 = vadd.f32 %v337_v19, %v214_v40  ;;  %v277_v43 = vadd.f32 %v337_v19, %v230_v41  ;;  %v216_v44 = vpop.f32.mrb[5].mxu0  ;;  %v232_v45 = vpop.f32.mrb[5].mxu1 }
 0x106   :  { %308 = vst [vmem:[%s490_s3 + $0x28] sm:$0xff] %v300_v39  ;;  %v217_v46 = vpop.f32.mrb[6].mxu0  ;;  %v233_v47 = vpop.f32.mrb[6].mxu1 }
 0x107   :  { %vm281_vm5 = vcmp.ge.f32.partialorder %v273_v42, 0.0  ;;  %v289_v48 = vmul.f32 0.1, %v273_v42  ;;  %vm285_vm6 = vcmp.ge.f32.partialorder %v277_v43, 0.0  ;;  %v293_v49 = vmul.f32 0.1, %v277_v43 }
 0x108   :  { %v274_v50 = vadd.f32 %v337_v19, %v217_v46  ;;  %v278_v51 = vadd.f32 %v337_v19, %v233_v47  ;;  %v219_v52 = vpop.f32.mrb[7].mxu0  ;;  %v235_v53 = vpop.f32.mrb[7].mxu1 }
 0x109   :  { %v297_v54 = vsel %vm281_vm5, %v273_v42, %v289_v48  ;;  %v301_v55 = vsel %vm285_vm6, %v277_v43, %v293_v49 }
 0x10a   :  { %305 = vst [vmem:[%s490_s3 + $0x10] sm:$0xff] %v297_v54  ;;  %309 = vst [vmem:[%s490_s3 + $0x30] sm:$0xff] %v301_v55  ;;  %vm282_vm7 = vcmp.ge.f32.partialorder %v274_v50, 0.0  ;;  %v290_v56 = vmul.f32 0.1, %v274_v50  ;;  %vm286_vm8 = vcmp.ge.f32.partialorder %v278_v51, 0.0 }
 0x10b   :  { %v294_v57 = vmul.f32 0.1, %v278_v51 }
 0x10c   :  { %v298_v58 = vsel %vm282_vm7, %v274_v50, %v290_v56 }
 0x10d   :  { %v302_v59 = vsel %vm286_vm8, %v278_v51, %v294_v57  ;;  %306 = vst [vmem:[%s490_s3 + $0x18] sm:$0xff] %v298_v58 }
 0x10e   :  { %310 = vst [vmem:[%s490_s3 + $0x38] sm:$0xff] %v302_v59 }

// kernel: multi_period_discriminator_forward.32
= control target key start
LH: loop header
LB: loop body
LE: loop exit
PB: predicated region body
PF: predicated region fallthrough
CT: control target
= control target key end

     0   :  { %s980_s1 = inlined_call_operand.vmem [shape: bf16[640,128], index: 1, kind: input, shape index: {}]   ;;  %s981_s0 = inlined_call_operand.vmem [shape: bf16[32,640], index: 0, kind: input, shape index: {}]   ;;  %s982_s2 = inlined_call_operand.vmem [shape: f32[1,128], index: 2, kind: input, shape index: {}]   ;;  %s983_s3 = inlined_call_operand.vmem [shape: f32[32,128], index: 3, kind: output, shape index: {}]  }
   0x1   :  { %v741_v0 = vld [vmem:[%s980_s1 + $0x40] sm:$0xff]   ;;  %v745_v4 = vld [vmem:[%s980_s1 + $0x48] sm:$0xff]   ;;  %v749_v8 = vld [vmem:[%s980_s1 + $0x50] sm:$0xff]  }
   0x2   :  { %v742_v1 = vld [vmem:[%s980_s1 + $0xc0] sm:$0xff]   ;;  %655 = vmatprep.subr.bf16.mxu0 %v741_v0  ;;  %v746_v5 = vld [vmem:[%s980_s1 + $0xc8] sm:$0xff]   ;;  %v750_v9 = vld [vmem:[%s980_s1 + $0xd0] sm:$0xff]  }
   0x3   :  { %v743_v2 = vld [vmem:[%s980_s1] sm:$0xff]   ;;  %683 = vmatprep.subr.bf16.mxu1 %v742_v1  ;;  %v747_v6 = vld [vmem:[%s980_s1 + $0x8] sm:$0xff]   ;;  %v751_v10 = vld [vmem:[%s980_s1 + $0x10] sm:$0xff]  }
   0x4   :  { %v744_v3 = vld [vmem:[%s980_s1 + $0x80] sm:$0xff]   ;;  %656 = vmatpush3.bf16.msra.mxu0 %v743_v2  ;;  %v748_v7 = vld [vmem:[%s980_s1 + $0x88] sm:$0xff]   ;;  %v752_v11 = vld [vmem:[%s980_s1 + $0x90] sm:$0xff]  }
   0x5   :  { %684 = vmatpush3.bf16.msra.mxu1 %v744_v3  ;;  %657 = vmatprep.subr.bf16.mxu0 %v745_v4  ;;  %v753_v12 = vld [vmem:[%s980_s1 + $0x58] sm:$0xff]   ;;  %v757_v16 = vld [vmem:[%s980_s1 + $0x60] sm:$0xff]   ;;  %v761_v20 = vld [vmem:[%s980_s1 + $0x68] sm:$0xff]  }
   0x6   :  { %685 = vmatprep.subr.bf16.mxu1 %v746_v5  ;;  %v754_v13 = vld [vmem:[%s980_s1 + $0xd8] sm:$0xff]   ;;  %v758_v17 = vld [vmem:[%s980_s1 + $0xe0] sm:$0xff]   ;;  %v762_v21 = vld [vmem:[%s980_s1 + $0xe8] sm:$0xff]  }
   0x7   :  { %v755_v14 = vld [vmem:[%s980_s1 + $0x18] sm:$0xff]   ;;  %v759_v18 = vld [vmem:[%s980_s1 + $0x20] sm:$0xff]   ;;  %v763_v22 = vld [vmem:[%s980_s1 + $0x28] sm:$0xff]  }
   0x8   :  { %658 = vmatpush3.bf16.msra.mxu0 %v747_v6  ;;  %v756_v15 = vld [vmem:[%s980_s1 + $0x98] sm:$0xff]   ;;  %v760_v19 = vld [vmem:[%s980_s1 + $0xa0] sm:$0xff]   ;;  %v764_v23 = vld [vmem:[%s980_s1 + $0xa8] sm:$0xff]  }
   0x9   :  { %686 = vmatpush3.bf16.msra.mxu1 %v748_v7  ;;  %659 = vmatprep.subr.bf16.mxu0 %v749_v8  ;;  %v765_v24 = vld [vmem:[%s980_s1 + $0x70] sm:$0xff]   ;;  %v769_v28 = vld [vmem:[%s980_s1 + $0x78] sm:$0xff]   ;;  %v778_v35 = vld [vmem:[%s981_s0 + $0xc] ss:$20 sps:$4 sm:$0xff]  }
   0xa   :  { %687 = vmatprep.subr.bf16.mxu1 %v750_v9  ;;  %v766_v25 = vld [vmem:[%s980_s1 + $0xf0] sm:$0xff]   ;;  %v770_v29 = vld [vmem:[%s980_s1 + $0xf8] sm:$0xff]   ;;  %v779_v36 = vld [vmem:[%s980_s1 + $0x100] sm:$0xff]   ;;  %492 = vmatprep.mubr.bf16.mxu1 %v778_v35 }
   0xb   :  { %v767_v26 = vld [vmem:[%s980_s1 + $0x30] sm:$0xff]   ;;  %v771_v30 = vld [vmem:[%s980_s1 + $0x38] sm:$0xff]   ;;  %v780_v37 = vld [vmem:[%s980_s1 + $0x108] sm:$0xff]  }
   0xc   :  { %660 = vmatpush3.bf16.msra.mxu0 %v751_v10  ;;  %v768_v27 = vld [vmem:[%s980_s1 + $0xb0] sm:$0xff]   ;;  %v772_v31 = vld [vmem:[%s980_s1 + $0xb8] sm:$0xff]   ;;  %v784_v39 = vld [vmem:[%s981_s0 + $0x2c] ss:$20 sps:$4 sm:$0xff]  }
   0xd   :  { %688 = vmatpush3.bf16.msra.mxu1 %v752_v11  ;;  %661 = vmatprep.subr.bf16.mxu0 %v753_v12  ;;  %v773_v32 = vld [vmem:[%s981_s0] ss:$20 sps:$4 sm:$0xff]   ;;  %v775_v33 = vld [vmem:[%s981_s0 + $0x4] ss:$20 sps:$4 sm:$0xff]   ;;  %v776_v34 = vld [vmem:[%s981_s0 + $0x8] ss:$20 sps:$4 sm:$0xff]  }
   0xe   :  { %689 = vmatprep.subr.bf16.mxu1 %v754_v13  ;;  %443 = vmatprep.mubr.bf16.mxu0 %v775_v33  ;;  %v781_v38 = vld [vmem:[%s980_s1 + $0x110] sm:$0xff]   ;;  %v782_v41 = vld [vmem:[%s980_s1 + $0x118] sm:$0xff]   ;;  %v783_v45 = vld [vmem:[%s980_s1 + $0x120] sm:$0xff]  }
   0xf   :  { %v786_v40 = vld [vmem:[%s981_s0 + $0x34] ss:$20 sps:$4 sm:$0xff]   ;;  %v790_v43 = vld [vmem:[%s981_s0 + $0x30] ss:$20 sps:$4 sm:$0xff]   ;;  %v792_v48 = vld [vmem:[%s980_s1 + $0x138] sm:$0xff]  }
  0x10   :  { %662 = vmatpush3.bf16.msra.mxu0 %v755_v14  ;;  %v789_v42 = vld [vmem:[%s981_s0 + $0x28] ss:$20 sps:$4 sm:$0xff]   ;;  %v793_v44 = vld [vmem:[%s981_s0 + $0x10] ss:$20 sps:$4 sm:$0xff]   ;;  %v794_v49 = vld [vmem:[%s981_s0 + $0x38] ss:$20 sps:$4 sm:$0xff]  }
  0x11   :  { %690 = vmatpush3.bf16.msra.mxu1 %v756_v15  ;;  %663 = vmatprep.subr.bf16.mxu0 %v757_v16  ;;  %v788_v46 = vld [vmem:[%s980_s1 + $0x128] sm:$0xff]   ;;  %v791_v47 = vld [vmem:[%s980_s1 + $0x130] sm:$0xff]   ;;  %v654_v15 = vld [vmem:[%s982_s2] ss:$0 sm:$0xff] }
  0x12   :  { %691 = vmatprep.subr.bf16.mxu1 %v758_v17 }
  0x14   :  { %664 = vmatpush3.bf16.msra.mxu0 %v759_v18 }
  0x15   :  { %692 = vmatpush3.bf16.msra.mxu1 %v760_v19  ;;  %665 = vmatprep.subr.bf16.mxu0 %v761_v20 }
  0x16   :  { %693 = vmatprep.subr.bf16.mxu1 %v762_v21 }
  0x18   :  { %666 = vmatpush3.bf16.msra.mxu0 %v763_v22 }
  0x19   :  { %694 = vmatpush3.bf16.msra.mxu1 %v764_v23  ;;  %667 = vmatprep.subr.bf16.mxu0 %v765_v24 }
  0x1a   :  { %695 = vmatprep.subr.bf16.mxu1 %v766_v25 }
  0x1c   :  { %668 = vmatpush3.bf16.msra.mxu0 %v767_v26 }
  0x1d   :  { %696 = vmatpush3.bf16.msra.mxu1 %v768_v27  ;;  %669 = vmatprep.subr.bf16.mxu0 %v769_v28 }
  0x1e   :  { %697 = vmatprep.subr.bf16.mxu1 %v770_v29 }
  0x20   :  { %670 = vmatpush3.bf16.msra.mxu0 %v771_v30 }
  0x21   :  { %698 = vmatpush3.bf16.msra.mxu1 %v772_v31  ;;  %721 = vmatprep.subr.bf16.mxu0 %v779_v36 }
  0x23   :  { %444 = vmatmul.mubr.bf16.vlgmr.msra.gmra.mrb[0].mxu0 %v773_v32 }
  0x24   :  { %493 = vmatmul.mubr.bf16.vlgmr.msra.gmra.mrb[0].mxu1 %v776_v34  ;;  %722 = vmatpush3.bf16.msra.mxu0 %v779_v36 }
  0x25   :  { %723 = vmatprep.subr.bf16.mxu0 %v780_v37  ;;  %451 = vmatprep.mubr.bf16.mxu0 %v784_v39 }
  0x26   :  { %500 = vmatprep.mubr.bf16.mxu1 %v786_v40 }
  0x28   :  { %724 = vmatpush3.bf16.msra.mxu0 %v780_v37 }
  0x29   :  { %725 = vmatprep.subr.bf16.mxu0 %v781_v38 }
  0x2b   :  { %452 = vmatmul.mubr.bf16.gmra.mrb[4].mxu0 %v789_v42 }
  0x2c   :  { %501 = vmatmul.mubr.bf16.gmra.mrb[4].mxu1 %v790_v43  ;;  %726 = vmatpush3.bf16.msra.mxu0 %v781_v38 }
  0x2d   :  { %727 = vmatprep.subr.bf16.mxu0 %v782_v41  ;;  %737 = vmatprep.mubr.bf16.mxu0 %v793_v44 }
  0x30   :  { %728 = vmatpush3.bf16.msra.mxu0 %v782_v41 }
  0x31   :  { %729 = vmatprep.subr.bf16.mxu0 %v783_v45 }
  0x34   :  { %730 = vmatpush3.bf16.msra.mxu0 %v783_v45 }
  0x35   :  { %731 = vmatprep.subr.bf16.mxu0 %v788_v46 }
  0x38   :  { %732 = vmatpush3.bf16.msra.mxu0 %v788_v46 }
  0x39   :  { %733 = vmatprep.subr.bf16.mxu0 %v791_v47 }
  0x3c   :  { %734 = vmatpush3.bf16.msra.mxu0 %v791_v47 }
  0x3d   :  { %735 = vmatprep.subr.bf16.mxu0 %v792_v48 }
  0x40   :  { %736 = vmatpush3.bf16.msra.mxu0 %v792_v48 }
  0x43   :  { %738 = vmatmul.mubr.bf16.vlgmr.msra.gmra.mrb[8].mxu0 %v794_v49 }
  0xf6   :  { %v671_v50 = vpop.f32.mrb[0].mxu0 }
  0xf7   :  { %v699_v51 = vpop.f32.mrb[0].mxu1  ;;  %v672_v52 = vpop.f32.mrb[1].mxu0 }
  0xf8   :  { %v673_v53 = vadd.f32 %v672_v52, %v671_v50  ;;  %v700_v54 = vpop.f32.mrb[1].mxu1  ;;  %v674_v55 = vpop.f32.mrb[2].mxu0 }
  0xf9   :  { %v701_v56 = vadd.f32 %v700_v54, %v699_v51  ;;  %v702_v57 = vpop.f32.mrb[2].mxu1  ;;  %v675_v58 = vpop.f32.mrb[3].mxu0 }
  0xfa   :  { %v676_v59 = vadd.f32 %v675_v58, %v674_v55  ;;  %v703_v60 = vpop.f32.mrb[3].mxu1 }
  0xfb   :  { %v704_v61 = vadd.f32 %v703_v60, %v702_v57  ;;  %v495_v62 = vadd.f32 %v701_v56, %v673_v53 }
  0xfd   :  { %v498_v63 = vadd.f32 %v704_v61, %v676_v59 }
  0xfe   :  { %v677_v0 = vpop.f32.mrb[4].mxu0 }
  0xff   :  { %v705_v1 = vpop.f32.mrb[4].mxu1  ;;  %v678_v2 = vpop.f32.mrb[5].mxu0 }
 0x100   :  { %v679_v3 = vadd.f32 %v678_v2, %v677_v0  ;;  %v706_v4 = vpop.f32.mrb[5].mxu1  ;;  %v680_v5 = vpop.f32.mrb[6].mxu0 }
 0x101   :  { %v707_v6 = vadd.f32 %v706_v4, %v705_v1  ;;  %v708_v7 = vpop.f32.mrb[6].mxu1  ;;  %v681_v8 = vpop.f32.mrb[7].mxu0 }
 0x102   :  { %v682_v9 = vadd.f32 %v681_v8, %v680_v5  ;;  %v709_v10 = vpop.f32.mrb[7].mxu1 }
 0x103   :  { %v710_v11 = vadd.f32 %v709_v10, %v708_v7  ;;  %v503_v12 = vadd.f32 %v707_v6, %v679_v3 }
 0x105   :  { %v506_v13 = vadd.f32 %v710_v11, %v682_v9 }
 0x116   :  { %v739_v14 = vpop.f32.mrb[8].mxu0 }
 0x117   :  { %v552_v16 = vadd.f32 %v739_v14, %v503_v12  ;;  %v543_v17 = vpop.f32.mrb[9].mxu0 }
 0x118   :  { %v544_v18 = vadd.f32 %v543_v17, %v495_v62  ;;  %v740_v19 = vpop.f32.mrb[10].mxu0 }
 0x119   :  { %v582_v20 = vadd.f32 %v654_v15, %v552_v16  ;;  %v555_v21 = vadd.f32 %v740_v19, %v506_v13  ;;  %v546_v22 = vpop.f32.mrb[11].mxu0 }
 0x11a   :  { %v580_v23 = vadd.f32 %v654_v15, %v544_v18  ;;  %v547_v24 = vadd.f32 %v546_v22, %v498_v63 }
 0x11b   :  { %vm586_vm0 = vcmp.ge.f32.partialorder %v582_v20, 0.0  ;;  %v590_v25 = vmul.f32 0.1, %v582_v20  ;;  %v583_v26 = vadd.f32 %v654_v15, %v555_v21 }
 0x11c   :  { %vm584_vm1 = vcmp.ge.f32.partialorder %v580_v23, 0.0  ;;  %v588_v27 = vmul.f32 0.1, %v580_v23  ;;  %v581_v28 = vadd.f32 %v654_v15, %v547_v24 }
 0x11d   :  { %v594_v29 = vsel %vm586_vm0, %v582_v20, %v590_v25  ;;  %vm587_vm2 = vcmp.ge.f32.partialorder %v583_v26, 0.0  ;;  %v591_v30 = vmul.f32 0.1, %v583_v26 }
 0x11e   :  { %598 = vst [vmem:[%s983_s3 + $0x10] sm:$0xff] %v594_v29  ;;  %v592_v31 = vsel %vm584_vm1, %v580_v23, %v588_v27  ;;  %vm585_vm3 = vcmp.ge.f32.partialorder %v581_v28, 0.0  ;;  %v589_v32 = vmul.f32 0.1, %v581_v28 }
 0x11f   :  { %596 = vst [vmem:[%s983_s3] sm:$0xff] %v592_v31  ;;  %v595_v33 = vsel %vm587_vm2, %v583_v26, %v591_v30 }
 0x120   :  { %599 = vst [vmem:[%s983_s3 + $0x18] sm:$0xff] %v595_v33  ;;  %v593_v34 = vsel %vm585_vm3, %v581_v28, %v589_v32 }
 0x121   :  { %597 = vst [vmem:[%s983_s3 + $0x8] sm:$0xff] %v593_v34 }

// kernel: multi_period_discriminator_forward.33
= control target key start
LH: loop header
LB: loop body
LE: loop exit
PB: predicated region body
PF: predicated region fallthrough
CT: control target
= control target key end

     0   :  { %v696_v34 = vmov 0.0   ;;  %vm697_vm0 = vmmov 0   ;;  %s862_s1 = inlined_call_operand.vmem [shape: bf16[640,128], index: 1, kind: input, shape index: {}]   ;;  %s863_s0 = inlined_call_operand.vmem [shape: bf16[16,640], index: 0, kind: input, shape index: {}]   ;;  %s864_s2 = inlined_call_operand.vmem [shape: f32[1,128], index: 2, kind: input, shape index: {}]   ;;  %s865_s3 = inlined_call_operand.vmem [shape: f32[16,128], index: 3, kind: output, shape index: {}]  }
   0x1   :  { %v649_v0 = vld [vmem:[%s862_s1 + $0x40] sm:$0xff]   ;;  %v653_v4 = vld [vmem:[%s862_s1 + $0x48] sm:$0xff]   ;;  %v657_v8 = vld [vmem:[%s862_s1 + $0x50] sm:$0xff]  }
   0x2   :  { %v650_v1 = vld [vmem:[%s862_s1 + $0xc0] sm:$0xff]   ;;  %574 = vmatprep.subr.bf16.mxu0 %v649_v0  ;;  %v654_v5 = vld [vmem:[%s862_s1 + $0xc8] sm:$0xff]   ;;  %v658_v9 = vld [vmem:[%s862_s1 + $0xd0] sm:$0xff]  }
   0x3   :  { %v651_v2 = vld [vmem:[%s862_s1] sm:$0xff]   ;;  %596 = vmatprep.subr.bf16.mxu1 %v650_v1  ;;  %v655_v6 = vld [vmem:[%s862_s1 + $0x8] sm:$0xff]   ;;  %v659_v10 = vld [vmem:[%s862_s1 + $0x10] sm:$0xff]  }
   0x4   :  { %v652_v3 = vld [vmem:[%s862_s1 + $0x80] sm:$0xff]   ;;  %575 = vmatpush3.bf16.msra.mxu0 %v651_v2  ;;  %v656_v7 = vld [vmem:[%s862_s1 + $0x88] sm:$0xff]   ;;  %v660_v11 = vld [vmem:[%s862_s1 + $0x90] sm:$0xff]  }
   0x5   :  { %597 = vmatpush3.bf16.msra.mxu1 %v652_v3  ;;  %576 = vmatprep.subr.bf16.mxu0 %v653_v4  ;;  %v661_v12 = vld [vmem:[%s862_s1 + $0x58] sm:$0xff]   ;;  %v665_v16 = vld [vmem:[%s862_s1 + $0x60] sm:$0xff]   ;;  %v669_v20 = vld [vmem:[%s862_s1 + $0x68] sm:$0xff]  }
   0x6   :  { %598 = vmatprep.subr.bf16.mxu1 %v654_v5  ;;  %v662_v13 = vld [vmem:[%s862_s1 + $0xd8] sm:$0xff]   ;;  %v666_v17 = vld [vmem:[%s862_s1 + $0xe0] sm:$0xff]   ;;  %v670_v21 = vld [vmem:[%s862_s1 + $0xe8] sm:$0xff]  }
   0x7   :  { %v663_v14 = vld [vmem:[%s862_s1 + $0x18] sm:$0xff]   ;;  %v667_v18 = vld [vmem:[%s862_s1 + $0x20] sm:$0xff]   ;;  %v671_v22 = vld [vmem:[%s862_s1 + $0x28] sm:$0xff]  }
   0x8   :  { %577 = vmatpush3.bf16.msra.mxu0 %v655_v6  ;;  %v664_v15 = vld [vmem:[%s862_s1 + $0x98] sm:$0xff]   ;;  %v668_v19 = vld [vmem:[%s862_s1 + $0xa0] sm:$0xff]   ;;  %v672_v23 = vld [vmem:[%s862_s1 + $0xa8] sm:$0xff]  }
   0x9   :  { %599 = vmatpush3.bf16.msra.mxu1 %v656_v7  ;;  %578 = vmatprep.subr.bf16.mxu0 %v657_v8  ;;  %v673_v24 = vld [vmem:[%s862_s1 + $0x70] sm:$0xff]   ;;  %v677_v28 = vld [vmem:[%s862_s1 + $0x78] sm:$0xff]   ;;  %v686_v36 = vld [vmem:[%s863_s0 + $0xc] ss:$20 sps:$4 sm:$0xff]  }
   0xa   :  { %600 = vmatprep.subr.bf16.mxu1 %v658_v9  ;;  %v674_v25 = vld [vmem:[%s862_s1 + $0xf0] sm:$0xff]   ;;  %v678_v29 = vld [vmem:[%s862_s1 + $0xf8] sm:$0xff]   ;;  %v687_v37 = vld [vmem:[%s862_s1 + $0x100] sm:$0xff]   ;;  %448 = vmatprep.mubr.bf16.mxu1 %v686_v36 }
   0xb   :  { %v675_v26 = vld [vmem:[%s862_s1 + $0x30] sm:$0xff]   ;;  %v679_v30 = vld [vmem:[%s862_s1 + $0x38] sm:$0xff]   ;;  %v688_v38 = vld [vmem:[%s862_s1 + $0x108] sm:$0xff]  }
   0xc   :  { %579 = vmatpush3.bf16.msra.mxu0 %v659_v10  ;;  %v676_v27 = vld [vmem:[%s862_s1 + $0xb0] sm:$0xff]   ;;  %v680_v31 = vld [vmem:[%s862_s1 + $0xb8] sm:$0xff]   ;;  %v691_v41 = vld [vmem:[%s862_s1 + $0x120] sm:$0xff]  }
   0xd   :  { %601 = vmatpush3.bf16.msra.mxu1 %v660_v11  ;;  %580 = vmatprep.subr.bf16.mxu0 %v661_v12  ;;  %v681_v32 = vld [vmem:[%s863_s0] ss:$20 sps:$4 sm:$0xff]   ;;  %v683_v33 = vld [vmem:[%s863_s0 + $0x4] ss:$20 sps:$4 sm:$0xff]   ;;  %v684_v35 = vld [vmem:[%s863_s0 + $0x8] ss:$20 sps:$4 sm:$0xff]  }
   0xe   :  { %602 = vmatprep.subr.bf16.mxu1 %v662_v13  ;;  %407 = vmatprep.mubr.bf16.mxu0 %v683_v33  ;;  %v689_v39 = vld [vmem:[%s862_s1 + $0x110] sm:$0xff]   ;;  %v690_v40 = vld [vmem:[%s862_s1 + $0x118] sm:$0xff]   ;;  %v692_v42 = vld [vmem:[%s862_s1 + $0x128] sm:$0xff]  }
   0xf   :  { %v693_v43 = vld [vmem:[%s862_s1 + $0x130] sm:$0xff]   ;;  %v694_v44 = vld [vmem:[%s862_s1 + $0x138] sm:$0xff]   ;;  %v573_v61 = vld [vmem:[%s864_s2] ss:$0 sm:$0xff] }
  0x10   :  { %581 = vmatpush3.bf16.msra.mxu0 %v663_v14  ;;  %v695_v45 = vld [vmem:[%s863_s0 + $0x10] ss:$20 sps:$4 sm:$0xff]  }
  0x11   :  { %603 = vmatpush3.bf16.msra.mxu1 %v664_v15  ;;  %582 = vmatprep.subr.bf16.mxu0 %v665_v16 }
  0x12   :  { %604 = vmatprep.subr.bf16.mxu1 %v666_v17 }
  0x14   :  { %583 = vmatpush3.bf16.msra.mxu0 %v667_v18 }
  0x15   :  { %605 = vmatpush3.bf16.msra.mxu1 %v668_v19  ;;  %584 = vmatprep.subr.bf16.mxu0 %v669_v20 }
  0x16   :  { %606 = vmatprep.subr.bf16.mxu1 %v670_v21 }
  0x18   :  { %585 = vmatpush3.bf16.msra.mxu0 %v671_v22 }
  0x19   :  { %607 = vmatpush3.bf16.msra.mxu1 %v672_v23  ;;  %586 = vmatprep.subr.bf16.mxu0 %v673_v24 }
  0x1a   :  { %608 = vmatprep.subr.bf16.mxu1 %v674_v25 }
  0x1c   :  { %587 = vmatpush3.bf16.msra.mxu0 %v675_v26 }
  0x1d   :  { %609 = vmatpush3.bf16.msra.mxu1 %v676_v27  ;;  %588 = vmatprep.subr.bf16.mxu0 %v677_v28 }
  0x1e   :  { %610 = vmatprep.subr.bf16.mxu1 %v678_v29 }
  0x20   :  { %589 = vmatpush3.bf16.msra.mxu0 %v679_v30 }
  0x21   :  { %611 = vmatpush3.bf16.msra.mxu1 %v680_v31  ;;  %627 = vmatprep.subr.bf16.mxu0 %v696_v34 }
  0x23   :  { %408 = vmatmul.mubr.bf16.vlgmr.msra.gmra.mrb[0].mxu0 %v681_v32 }
  0x24   :  { %449 = vmatmul.mubr.bf16.vlgmr.msra.gmra.mrb[0].mxu1 %v684_v35  ;;  %628 = vmatpush3.bf16.msra.mxu0 %v687_v37 }
  0x25   :  { %629 = vmatprep.subr.bf16.mxu0 %v696_v34  ;;  %643 = vmatprep.mubr.msk.bf16.mxu0 %vm697_vm0, %v696_v34 }
  0x28   :  { %630 = vmatpush3.bf16.msra.mxu0 %v688_v38 }
  0x29   :  { %631 = vmatprep.subr.bf16.mxu0 %v696_v34 }
  0x2c   :  { %632 = vmatpush3.bf16.msra.mxu0 %v689_v39 }
  0x2d   :  { %633 = vmatprep.subr.bf16.mxu0 %v696_v34 }
  0x30   :  { %634 = vmatpush3.bf16.msra.mxu0 %v690_v40 }
  0x31   :  { %635 = vmatprep.subr.bf16.mxu0 %v696_v34 }
  0x34   :  { %636 = vmatpush3.bf16.msra.mxu0 %v691_v41 }
  0x35   :  { %637 = vmatprep.subr.bf16.mxu0 %v696_v34 }
  0x38   :  { %638 = vmatpush3.bf16.msra.mxu0 %v692_v42 }
  0x39   :  { %639 = vmatprep.subr.bf16.mxu0 %v696_v34 }
  0x3c   :  { %640 = vmatpush3.bf16.msra.mxu0 %v693_v43 }
  0x3d   :  { %641 = vmatprep.subr.bf16.mxu0 %v696_v34 }
  0x40   :  { %642 = vmatpush3.bf16.msra.mxu0 %v694_v44 }
  0x43   :  { %644 = vmatmul.mubr.bf16.vlgmr.msra.gmra.mrb[4].mxu0 %v695_v45 }
  0xf6   :  { %v590_v46 = vpop.f32.mrb[0].mxu0 }
  0xf7   :  { %v612_v47 = vpop.f32.mrb[0].mxu1  ;;  %v591_v48 = vpop.f32.mrb[1].mxu0 }
  0xf8   :  { %v592_v49 = vadd.f32 %v591_v48, %v590_v46  ;;  %v613_v50 = vpop.f32.mrb[1].mxu1  ;;  %v593_v51 = vpop.f32.mrb[2].mxu0 }
  0xf9   :  { %v614_v52 = vadd.f32 %v613_v50, %v612_v47  ;;  %v615_v53 = vpop.f32.mrb[2].mxu1  ;;  %v594_v54 = vpop.f32.mrb[3].mxu0 }
  0xfa   :  { %v595_v55 = vadd.f32 %v594_v54, %v593_v51  ;;  %v616_v56 = vpop.f32.mrb[3].mxu1 }
  0xfb   :  { %v617_v57 = vadd.f32 %v616_v56, %v615_v53  ;;  %v451_v58 = vadd.f32 %v614_v52, %v592_v49 }
  0xfd   :  { %v454_v59 = vadd.f32 %v617_v57, %v595_v55 }
 0x116   :  { %v491_v60 = vpop.f32.mrb[4].mxu0 }
 0x117   :  { %v492_v62 = vadd.f32 %v491_v60, %v451_v58  ;;  %v645_v63 = vpop.f32.mrb[5].mxu0 }
 0x118   :  { %v494_v0 = vpop.f32.mrb[6].mxu0 }
 0x119   :  { %v514_v1 = vadd.f32 %v573_v61, %v492_v62  ;;  %v495_v2 = vadd.f32 %v494_v0, %v454_v59  ;;  %v646_v3 = vpop.f32.mrb[7].mxu0 }
 0x11b   :  { %vm516_vm1 = vcmp.ge.f32.partialorder %v514_v1, 0.0  ;;  %v518_v4 = vmul.f32 0.1, %v514_v1  ;;  %v515_v5 = vadd.f32 %v573_v61, %v495_v2 }
 0x11d   :  { %v520_v6 = vsel %vm516_vm1, %v514_v1, %v518_v4  ;;  %vm517_vm2 = vcmp.ge.f32.partialorder %v515_v5, 0.0  ;;  %v519_v7 = vmul.f32 0.1, %v515_v5 }
 0x11e   :  { %522 = vst [vmem:[%s865_s3] sm:$0xff] %v520_v6 }
 0x11f   :  { %v521_v8 = vsel %vm517_vm2, %v515_v5, %v519_v7 }
 0x120   :  { %523 = vst [vmem:[%s865_s3 + $0x8] sm:$0xff] %v521_v8 }

// kernel: multi_period_discriminator_forward.35
= control target key start
LH: loop header
LB: loop body
LE: loop exit
PB: predicated region body
PF: predicated region fallthrough
CT: control target
= control target key end

     0   :  { %v450_v1 = vmov 0.0   ;;  %vm451_vm0 = vmmov 0   ;;  %s562_s1 = inlined_call_operand.vmem [shape: bf16[384,128], index: 1, kind: input, shape index: {}]   ;;  %s563_s0 = inlined_call_operand.vmem [shape: bf16[16,384], index: 0, kind: input, shape index: {}]   ;;  %s564_s2 = inlined_call_operand.vmem [shape: f32[1,128], index: 2, kind: input, shape index: {}]   ;;  %s565_s3 = inlined_call_operand.vmem [shape: f32[16,128], index: 3, kind: output, shape index: {}]  }
   0x1   :  { %v422_v0 = vld [vmem:[%s562_s1 + $0x40] sm:$0xff]   ;;  %400 = vmatprep.subr.bf16.mxu1 %v450_v1  ;;  %416 = vmatprep.mubr.msk.bf16.mxu1 %vm451_vm0, %v450_v1  ;;  %v425_v4 = vld [vmem:[%s562_s1 + $0x48] sm:$0xff]   ;;  %v428_v7 = vld [vmem:[%s562_s1 + $0x50] sm:$0xff]  }
   0x2   :  { %v423_v2 = vld [vmem:[%s562_s1] sm:$0xff]   ;;  %369 = vmatprep.subr.bf16.mxu0 %v422_v0  ;;  %v426_v5 = vld [vmem:[%s562_s1 + $0x8] sm:$0xff]   ;;  %v429_v8 = vld [vmem:[%s562_s1 + $0x10] sm:$0xff]  }
   0x3   :  { %v424_v3 = vld [vmem:[%s562_s1 + $0x80] sm:$0xff]   ;;  %370 = vmatpush3.bf16.msra.mxu0 %v423_v2  ;;  %v427_v6 = vld [vmem:[%s562_s1 + $0x88] sm:$0xff]   ;;  %v430_v9 = vld [vmem:[%s562_s1 + $0x90] sm:$0xff]  }
   0x4   :  { %401 = vmatpush3.bf16.msra.mxu1 %v424_v3  ;;  %371 = vmatprep.subr.bf16.mxu0 %v425_v4  ;;  %v431_v10 = vld [vmem:[%s562_s1 + $0x58] sm:$0xff]   ;;  %v434_v13 = vld [vmem:[%s562_s1 + $0x60] sm:$0xff]   ;;  %v437_v16 = vld [vmem:[%s562_s1 + $0x68] sm:$0xff]  }
   0x5   :  { %402 = vmatprep.subr.bf16.mxu1 %v450_v1  ;;  %v432_v11 = vld [vmem:[%s562_s1 + $0x18] sm:$0xff]   ;;  %v435_v14 = vld [vmem:[%s562_s1 + $0x20] sm:$0xff]   ;;  %v438_v17 = vld [vmem:[%s562_s1 + $0x28] sm:$0xff]  }
   0x6   :  { %v433_v12 = vld [vmem:[%s562_s1 + $0x98] sm:$0xff]   ;;  %v436_v15 = vld [vmem:[%s562_s1 + $0xa0] sm:$0xff]   ;;  %v439_v18 = vld [vmem:[%s562_s1 + $0xa8] sm:$0xff]  }
   0x7   :  { %372 = vmatpush3.bf16.msra.mxu0 %v426_v5  ;;  %v440_v19 = vld [vmem:[%s562_s1 + $0x70] sm:$0xff]   ;;  %v443_v22 = vld [vmem:[%s562_s1 + $0x78] sm:$0xff]   ;;  %v446_v26 = vld [vmem:[%s563_s0] ss:$12 sps:$4 sm:$0xff]  }
   0x8   :  { %403 = vmatpush3.bf16.msra.mxu1 %v427_v6  ;;  %373 = vmatprep.subr.bf16.mxu0 %v428_v7  ;;  %v441_v20 = vld [vmem:[%s562_s1 + $0x30] sm:$0xff]   ;;  %v444_v24 = vld [vmem:[%s562_s1 + $0x38] sm:$0xff]   ;;  %v368_v34 = vld [vmem:[%s564_s2] ss:$0 sm:$0xff] }
   0x9   :  { %404 = vmatprep.subr.bf16.mxu1 %v450_v1  ;;  %v442_v21 = vld [vmem:[%s562_s1 + $0xb0] sm:$0xff]   ;;  %v445_v25 = vld [vmem:[%s562_s1 + $0xb8] sm:$0xff]  }
   0xa   :  { %v448_v23 = vld [vmem:[%s563_s0 + $0x4] ss:$12 sps:$4 sm:$0xff]   ;;  %v449_v27 = vld [vmem:[%s563_s0 + $0x8] ss:$12 sps:$4 sm:$0xff]  }
   0xb   :  { %374 = vmatpush3.bf16.msra.mxu0 %v429_v8  ;;  %267 = vmatprep.mubr.bf16.mxu0 %v448_v23 }
   0xc   :  { %405 = vmatpush3.bf16.msra.mxu1 %v430_v9  ;;  %375 = vmatprep.subr.bf16.mxu0 %v431_v10 }
   0xd   :  { %406 = vmatprep.subr.bf16.mxu1 %v450_v1 }
   0xf   :  { %376 = vmatpush3.bf16.msra.mxu0 %v432_v11 }
  0x10   :  { %407 = vmatpush3.bf16.msra.mxu1 %v433_v12  ;;  %377 = vmatprep.subr.bf16.mxu0 %v434_v13 }
  0x11   :  { %408 = vmatprep.subr.bf16.mxu1 %v450_v1 }
  0x13   :  { %378 = vmatpush3.bf16.msra.mxu0 %v435_v14 }
  0x14   :  { %409 = vmatpush3.bf16.msra.mxu1 %v436_v15  ;;  %379 = vmatprep.subr.bf16.mxu0 %v437_v16 }
  0x15   :  { %410 = vmatprep.subr.bf16.mxu1 %v450_v1 }
  0x17   :  { %380 = vmatpush3.bf16.msra.mxu0 %v438_v17 }
  0x18   :  { %411 = vmatpush3.bf16.msra.mxu1 %v439_v18  ;;  %381 = vmatprep.subr.bf16.mxu0 %v440_v19 }
  0x19   :  { %412 = vmatprep.subr.bf16.mxu1 %v450_v1 }
  0x1b   :  { %382 = vmatpush3.bf16.msra.mxu0 %v441_v20 }
  0x1c   :  { %413 = vmatpush3.bf16.msra.mxu1 %v442_v21  ;;  %383 = vmatprep.subr.bf16.mxu0 %v443_v22 }
  0x1d   :  { %414 = vmatprep.subr.bf16.mxu1 %v450_v1 }
  0x1f   :  { %384 = vmatpush3.bf16.msra.mxu0 %v444_v24 }
  0x20   :  { %415 = vmatpush3.bf16.msra.mxu1 %v445_v25 }
  0x22   :  { %268 = vmatmul.mubr.bf16.vlgmr.msra.gmra.mrb[0].mxu0 %v446_v26 }
  0x23   :  { %417 = vmatmul.mubr.bf16.vlgmr.msra.gmra.mrb[0].mxu1 %v449_v27 }
  0xf5   :  { %v385_v28 = vpop.f32.mrb[0].mxu0 }
  0xf6   :  { %v310_v29 = vpop.f32.mrb[0].mxu1  ;;  %v386_v30 = vpop.f32.mrb[1].mxu0 }
  0xf7   :  { %v387_v31 = vadd.f32 %v386_v30, %v385_v28  ;;  %v418_v32 = vpop.f32.mrb[1].mxu1  ;;  %v388_v33 = vpop.f32.mrb[2].mxu0 }
  0xf8   :  { %v313_v35 = vpop.f32.mrb[2].mxu1  ;;  %v389_v36 = vpop.f32.mrb[3].mxu0 }
  0xf9   :  { %v311_v37 = vadd.f32 %v387_v31, %v310_v29  ;;  %v390_v38 = vadd.f32 %v389_v36, %v388_v33  ;;  %v419_v39 = vpop.f32.mrb[3].mxu1 }
  0xfb   :  { %v333_v40 = vadd.f32 %v368_v34, %v311_v37  ;;  %v314_v41 = vadd.f32 %v390_v38, %v313_v35 }
  0xfd   :  { %335 = vst [vmem:[%s565_s3] sm:$0xff] %v333_v40  ;;  %v334_v42 = vadd.f32 %v368_v34, %v314_v41 }
  0xff   :  { %336 = vst [vmem:[%s565_s3 + $0x8] sm:$0xff] %v334_v42 }

// kernel: multi_period_discriminator_forward.42
= control target key start
LH: loop header
LB: loop body
LE: loop exit
PB: predicated region body
PF: predicated region fallthrough
CT: control target
= control target key end

     0   :  { %vm159_vm0 = vcmask 130048   ;;  %s783_s1 = inlined_call_operand.vmem [shape: bf16[16,128], index: 1, kind: input, shape index: {}]   ;;  %s784_s0 = inlined_call_operand.vmem [shape: bf16[192,16], index: 0, kind: input, shape index: {}]   ;;  %s785_s2 = inlined_call_operand.vmem [shape: f32[1,128], index: 2, kind: input, shape index: {}]   ;;  %s786_s3 = inlined_call_operand.vmem [shape: f32[192,128], index: 3, kind: output, shape index: {}]  }
   0x1   :  { %v598_v0 = vld [vmem:[%s783_s1] sm:$0xff]   ;;  %v600_v2 = vld [vmem:[%s784_s0 + $0x30] sm:$0xff]   ;;  %v601_v3 = vld [vmem:[%s784_s0 + $0x8] sm:$0xff]  }
   0x2   :  { %v599_v1 = vld [vmem:[%s784_s0] sm:$0xff]   ;;  %570 = vmatprep.subr.bf16.mxu0 %v598_v0  ;;  %596 = vmatprep.subr.bf16.mxu1 %v598_v0  ;;  %v602_v4 = vld [vmem:[%s784_s0 + $0x38] sm:$0xff]   ;;  %v603_v5 = vld [vmem:[%s784_s0 + $0x10] sm:$0xff]  }
   0x3   :  { %571 = vmatpush3.bf16.msra.mxu0 %v598_v0  ;;  %597 = vmatpush3.bf16.msra.mxu1 %v598_v0  ;;  %v604_v6 = vld [vmem:[%s784_s0 + $0x40] sm:$0xff]   ;;  %v605_v7 = vld [vmem:[%s784_s0 + $0x18] sm:$0xff]   ;;  %v606_v8 = vld [vmem:[%s784_s0 + $0x48] sm:$0xff]  }
   0x4   :  { %572 = vmatprep.mubr.msk.bf16.mxu0 %vm159_vm0, %v599_v1  ;;  %584 = vmatprep.mubr.msk.bf16.mxu1 %vm159_vm0, %v600_v2  ;;  %v607_v9 = vld [vmem:[%s784_s0 + $0x20] sm:$0xff]   ;;  %v608_v10 = vld [vmem:[%s784_s0 + $0x50] sm:$0xff]   ;;  %v609_v11 = vld [vmem:[%s784_s0 + $0x28] sm:$0xff]  }
   0x5   :  { %v610_v12 = vld [vmem:[%s784_s0 + $0x58] sm:$0xff]   ;;  %v685_v13 = vld [vmem:[%s785_s2] ss:$0 sm:$0xff] }
   0x6   :  { %573 = vmatmul.mubr.msk.bf16.vlgmr.msra.gmra.mrb[0].mxu0 %vm159_vm0, %v601_v3  ;;  %585 = vmatmul.mubr.msk.bf16.vlgmr.msra.gmra.mrb[0].mxu1 %vm159_vm0, %v602_v4 }
   0x7   :  { %576 = vmatprep.mubr.msk.bf16.mxu0 %vm159_vm0, %v603_v5  ;;  %588 = vmatprep.mubr.msk.bf16.mxu1 %vm159_vm0, %v604_v6 }
   0xe   :  { %577 = vmatmul.mubr.msk.bf16.gmra.mrb[4].mxu0 %vm159_vm0, %v605_v7  ;;  %589 = vmatmul.mubr.msk.bf16.gmra.mrb[4].mxu1 %vm159_vm0, %v606_v8 }
   0xf   :  { %580 = vmatprep.mubr.msk.bf16.mxu0 %vm159_vm0, %v607_v9  ;;  %592 = vmatprep.mubr.msk.bf16.mxu1 %vm159_vm0, %v608_v10 }
  0x16   :  { %581 = vmatmul.mubr.msk.bf16.gmra.mrb[8].mxu0 %vm159_vm0, %v609_v11  ;;  %593 = vmatmul.mubr.msk.bf16.gmra.mrb[8].mxu1 %vm159_vm0, %v610_v12 }
  0xd9   :  { %v574_v14 = vpop.f32.mrb[0].mxu0  ;;  %v586_v15 = vpop.f32.mrb[0].mxu1 }
  0xda   :  { %v409_v16 = vadd.f32 %v574_v14, %v685_v13  ;;  %v421_v17 = vadd.f32 %v586_v15, %v685_v13  ;;  %v230_v18 = vpop.f32.mrb[1].mxu0  ;;  %v278_v19 = vpop.f32.mrb[1].mxu1 }
  0xdb   :  { %v407_v20 = vadd.f32 %v685_v13, %v230_v18  ;;  %v419_v21 = vadd.f32 %v685_v13, %v278_v19  ;;  %v575_v22 = vpop.f32.mrb[2].mxu0  ;;  %v587_v23 = vpop.f32.mrb[2].mxu1 }
  0xdc   :  { %vm433_vm1 = vcmp.ge.f32.partialorder %v409_v16, 0.0  ;;  %v457_v24 = vmul.f32 0.1, %v409_v16  ;;  %vm445_vm2 = vcmp.ge.f32.partialorder %v421_v17, 0.0  ;;  %v469_v25 = vmul.f32 0.1, %v421_v17 }
  0xdd   :  { %vm431_vm3 = vcmp.ge.f32.partialorder %v407_v20, 0.0  ;;  %v455_v26 = vmul.f32 0.1, %v407_v20  ;;  %vm443_vm4 = vcmp.ge.f32.partialorder %v419_v21, 0.0  ;;  %v467_v27 = vmul.f32 0.1, %v419_v21 }
  0xde   :  { %v481_v28 = vsel %vm433_vm1, %v409_v16, %v457_v24  ;;  %v493_v29 = vsel %vm445_vm2, %v421_v17, %v469_v25  ;;  %v410_v30 = vadd.f32 %v575_v22, %v685_v13  ;;  %v422_v31 = vadd.f32 %v587_v23, %v685_v13  ;;  %v233_v32 = vpop.f32.mrb[3].mxu0  ;;  %v281_v33 = vpop.f32.mrb[3].mxu1 }
  0xdf   :  { %505 = vst [vmem:[%s786_s3 + $0x10] sm:$0xff] %v481_v28  ;;  %517 = vst [vmem:[%s786_s3 + $0x70] sm:$0xff] %v493_v29  ;;  %v479_v34 = vsel %vm431_vm3, %v407_v20, %v455_v26  ;;  %v491_v35 = vsel %vm443_vm4, %v419_v21, %v467_v27  ;;  %v408_v36 = vadd.f32 %v685_v13, %v233_v32 }
  0xe0   :  { %v420_v37 = vadd.f32 %v685_v13, %v281_v33  ;;  %503 = vst [vmem:[%s786_s3] sm:$0xff] %v479_v34  ;;  %515 = vst [vmem:[%s786_s3 + $0x60] sm:$0xff] %v491_v35  ;;  %vm434_vm5 = vcmp.ge.f32.partialorder %v410_v30, 0.0  ;;  %v458_v38 = vmul.f32 0.1, %v410_v30  ;;  %vm446_vm6 = vcmp.ge.f32.partialorder %v422_v31, 0.0 }
  0xe1   :  { %v470_v39 = vmul.f32 0.1, %v422_v31  ;;  %vm432_vm7 = vcmp.ge.f32.partialorder %v408_v36, 0.0  ;;  %v456_v40 = vmul.f32 0.1, %v408_v36  ;;  %v578_v44 = vpop.f32.mrb[4].mxu0 }
  0xe2   :  { %vm444_vm8 = vcmp.ge.f32.partialorder %v420_v37, 0.0  ;;  %v468_v41 = vmul.f32 0.1, %v420_v37  ;;  %v482_v42 = vsel %vm434_vm5, %v410_v30, %v458_v38  ;;  %v590_v45 = vpop.f32.mrb[4].mxu1  ;;  %v413_v48 = vadd.f32 %v578_v44, %v685_v13  ;;  %v246_v50 = vpop.f32.mrb[5].mxu0 }
  0xe3   :  { %v494_v43 = vsel %vm446_vm6, %v422_v31, %v470_v39  ;;  %506 = vst [vmem:[%s786_s3 + $0x18] sm:$0xff] %v482_v42  ;;  %v480_v46 = vsel %vm432_vm7, %v408_v36, %v456_v40  ;;  %v425_v49 = vadd.f32 %v590_v45, %v685_v13  ;;  %v294_v51 = vpop.f32.mrb[5].mxu1  ;;  %v411_v52 = vadd.f32 %v685_v13, %v246_v50  ;;  %v579_v54 = vpop.f32.mrb[6].mxu0 }
  0xe4   :  { %518 = vst [vmem:[%s786_s3 + $0x78] sm:$0xff] %v494_v43  ;;  %v492_v47 = vsel %vm444_vm8, %v420_v37, %v468_v41  ;;  %504 = vst [vmem:[%s786_s3 + $0x8] sm:$0xff] %v480_v46  ;;  %v423_v53 = vadd.f32 %v685_v13, %v294_v51  ;;  %v591_v55 = vpop.f32.mrb[6].mxu1  ;;  %vm437_vm9 = vcmp.ge.f32.partialorder %v413_v48, 0.0  ;;  %v461_v56 = vmul.f32 0.1, %v413_v48 }
  0xe5   :  { %516 = vst [vmem:[%s786_s3 + $0x68] sm:$0xff] %v492_v47  ;;  %vm449_vm10 = vcmp.ge.f32.partialorder %v425_v49, 0.0  ;;  %v473_v57 = vmul.f32 0.1, %v425_v49  ;;  %vm435_vm11 = vcmp.ge.f32.partialorder %v411_v52, 0.0  ;;  %v414_v62 = vadd.f32 %v579_v54, %v685_v13  ;;  %v249_v0 = vpop.f32.mrb[7].mxu0 }
  0xe6   :  { %v459_v58 = vmul.f32 0.1, %v411_v52  ;;  %vm447_vm12 = vcmp.ge.f32.partialorder %v423_v53, 0.0  ;;  %v471_v59 = vmul.f32 0.1, %v423_v53  ;;  %v485_v60 = vsel %vm437_vm9, %v413_v48, %v461_v56  ;;  %v297_v1 = vpop.f32.mrb[7].mxu1 }
  0xe7   :  { %v497_v61 = vsel %vm449_vm10, %v425_v49, %v473_v57  ;;  %v426_v63 = vadd.f32 %v591_v55, %v685_v13  ;;  %509 = vst [vmem:[%s786_s3 + $0x30] sm:$0xff] %v485_v60  ;;  %v412_v4 = vadd.f32 %v685_v13, %v249_v0  ;;  %v424_v5 = vadd.f32 %v685_v13, %v297_v1 }
  0xe8   :  { %521 = vst [vmem:[%s786_s3 + $0x90] sm:$0xff] %v497_v61  ;;  %v483_v2 = vsel %vm435_vm11, %v411_v52, %v459_v58  ;;  %v495_v3 = vsel %vm447_vm12, %v423_v53, %v471_v59  ;;  %vm438_vm13 = vcmp.ge.f32.partialorder %v414_v62, 0.0  ;;  %v462_v6 = vmul.f32 0.1, %v414_v62 }
  0xe9   :  { %507 = vst [vmem:[%s786_s3 + $0x20] sm:$0xff] %v483_v2  ;;  %519 = vst [vmem:[%s786_s3 + $0x80] sm:$0xff] %v495_v3  ;;  %vm450_vm14 = vcmp.ge.f32.partialorder %v426_v63, 0.0  ;;  %v474_v7 = vmul.f32 0.1, %v426_v63  ;;  %vm436_vm15 = vcmp.ge.f32.partialorder %v412_v4, 0.0 }
  0xea   :  { %v460_v8 = vmul.f32 0.1, %v412_v4  ;;  %vm448_vm0 = vcmp.ge.f32.partialorder %v424_v5, 0.0  ;;  %v472_v9 = vmul.f32 0.1, %v424_v5  ;;  %v486_v10 = vsel %vm438_vm13, %v414_v62, %v462_v6  ;;  %v582_v12 = vpop.f32.mrb[8].mxu0 }
  0xeb   :  { %v498_v11 = vsel %vm450_vm14, %v426_v63, %v474_v7  ;;  %v594_v14 = vpop.f32.mrb[8].mxu1  ;;  %510 = vst [vmem:[%s786_s3 + $0x38] sm:$0xff] %v486_v10  ;;  %v417_v17 = vadd.f32 %v582_v12, %v685_v13  ;;  %v262_v19 = vpop.f32.mrb[9].mxu0 }
  0xec   :  { %522 = vst [vmem:[%s786_s3 + $0x98] sm:$0xff] %v498_v11  ;;  %v484_v15 = vsel %vm436_vm15, %v412_v4, %v460_v8  ;;  %v496_v16 = vsel %vm448_vm0, %v424_v5, %v472_v9  ;;  %v429_v18 = vadd.f32 %v594_v14, %v685_v13  ;;  %v310_v20 = vpop.f32.mrb[9].mxu1  ;;  %v415_v21 = vadd.f32 %v685_v13, %v262_v19  ;;  %v583_v23 = vpop.f32.mrb[10].mxu0 }
  0xed   :  { %508 = vst [vmem:[%s786_s3 + $0x28] sm:$0xff] %v484_v15  ;;  %520 = vst [vmem:[%s786_s3 + $0x88] sm:$0xff] %v496_v16  ;;  %v427_v22 = vadd.f32 %v685_v13, %v310_v20  ;;  %v595_v24 = vpop.f32.mrb[10].mxu1  ;;  %vm441_vm1 = vcmp.ge.f32.partialorder %v417_v17, 0.0  ;;  %v465_v25 = vmul.f32 0.1, %v417_v17  ;;  %v418_v31 = vadd.f32 %v583_v23, %v685_v13 }
  0xee   :  { %vm453_vm2 = vcmp.ge.f32.partialorder %v429_v18, 0.0  ;;  %v477_v26 = vmul.f32 0.1, %v429_v18  ;;  %vm439_vm3 = vcmp.ge.f32.partialorder %v415_v21, 0.0  ;;  %v463_v27 = vmul.f32 0.1, %v415_v21 }
  0xef   :  { %vm451_vm4 = vcmp.ge.f32.partialorder %v427_v22, 0.0  ;;  %v475_v28 = vmul.f32 0.1, %v427_v22  ;;  %v489_v29 = vsel %vm441_vm1, %v417_v17, %v465_v25  ;;  %v430_v32 = vadd.f32 %v595_v24, %v685_v13  ;;  %v265_v33 = vpop.f32.mrb[11].mxu0  ;;  %v313_v34 = vpop.f32.mrb[11].mxu1 }
  0xf0   :  { %v501_v30 = vsel %vm453_vm2, %v429_v18, %v477_v26  ;;  %513 = vst [vmem:[%s786_s3 + $0x50] sm:$0xff] %v489_v29  ;;  %v487_v35 = vsel %vm439_vm3, %v415_v21, %v463_v27  ;;  %v416_v37 = vadd.f32 %v685_v13, %v265_v33  ;;  %v428_v38 = vadd.f32 %v685_v13, %v313_v34 }
  0xf1   :  { %525 = vst [vmem:[%s786_s3 + $0xb0] sm:$0xff] %v501_v30  ;;  %v499_v36 = vsel %vm451_vm4, %v427_v22, %v475_v28  ;;  %511 = vst [vmem:[%s786_s3 + $0x40] sm:$0xff] %v487_v35  ;;  %vm442_vm5 = vcmp.ge.f32.partialorder %v418_v31, 0.0  ;;  %v466_v39 = vmul.f32 0.1, %v418_v31  ;;  %vm454_vm6 = vcmp.ge.f32.partialorder %v430_v32, 0.0 }
  0xf2   :  { %523 = vst [vmem:[%s786_s3 + $0xa0] sm:$0xff] %v499_v36  ;;  %v478_v40 = vmul.f32 0.1, %v430_v32  ;;  %vm440_vm7 = vcmp.ge.f32.partialorder %v416_v37, 0.0  ;;  %v464_v41 = vmul.f32 0.1, %v416_v37 }
  0xf3   :  { %vm452_vm8 = vcmp.ge.f32.partialorder %v428_v38, 0.0  ;;  %v476_v42 = vmul.f32 0.1, %v428_v38  ;;  %v490_v43 = vsel %vm442_vm5, %v418_v31, %v466_v39 }
  0xf4   :  { %v502_v44 = vsel %vm454_vm6, %v430_v32, %v478_v40  ;;  %514 = vst [vmem:[%s786_s3 + $0x58] sm:$0xff] %v490_v43  ;;  %v488_v13 = vsel %vm440_vm7, %v416_v37, %v464_v41 }
  0xf5   :  { %526 = vst [vmem:[%s786_s3 + $0xb8] sm:$0xff] %v502_v44  ;;  %v500_v45 = vsel %vm452_vm8, %v428_v38, %v476_v42  ;;  %512 = vst [vmem:[%s786_s3 + $0x48] sm:$0xff] %v488_v13 }
  0xf6   :  { %524 = vst [vmem:[%s786_s3 + $0xa8] sm:$0xff] %v500_v45 }

// kernel: multi_period_discriminator_forward.49
= control target key start
LH: loop header
LB: loop body
LE: loop exit
PB: predicated region body
PF: predicated region fallthrough
CT: control target
= control target key end

     0   :  { %v429_v0 = vmov 0   ;;  %vm174_vm0 = vcmask 261120   ;;  %s560_s1 = inlined_call_operand.vmem [shape: bf16[160,128], index: 1, kind: input, shape index: {}]   ;;  %s561_s0 = inlined_call_operand.vmem [shape: bf16[80,160], index: 0, kind: input, shape index: {}]   ;;  %s562_s2 = inlined_call_operand.vmem [shape: f32[1,128], index: 2, kind: input, shape index: {}]   ;;  %s563_s3 = inlined_call_operand.vmem [shape: f32[80,128], index: 3, kind: output, shape index: {}]  }
   0x1   :  { %190 = vmatprep.subr.bf16.mxu0 %v429_v0  ;;  %v404_v1 = vld [vmem:[%s560_s1] sm:$0xff]   ;;  %383 = vmatprep.subr.bf16.mxu1 %v429_v0  ;;  %v405_v2 = vld [vmem:[%s560_s1 + $0x8] sm:$0xff]   ;;  %v406_v3 = vld [vmem:[%s560_s1 + $0x10] sm:$0xff]  }
   0x2   :  { %191 = vmatpush1.bf16.msra.mxu0 %v404_v1  ;;  %393 = vmatpush1.bf16.msra.mxu1 %v404_v1  ;;  %v407_v4 = vld [vmem:[%s560_s1 + $0x18] sm:$0xff]   ;;  %v416_v5 = vld [vmem:[%s561_s0 + $0x4] ss:$8 sps:$4 sm:$0xff]   ;;  %v410_v9 = vld [vmem:[%s560_s1 + $0x30] sm:$0xff]  }
   0x3   :  { %192 = vmatprep.subr.bf16.mxu0 %v429_v0  ;;  %384 = vmatprep.subr.bf16.mxu1 %v429_v0  ;;  %v419_v6 = vld [vmem:[%s561_s0 + $0x34] ss:$8 sps:$4 sm:$0xff]   ;;  %v408_v7 = vld [vmem:[%s560_s1 + $0x20] sm:$0xff]   ;;  %v409_v8 = vld [vmem:[%s560_s1 + $0x28] sm:$0xff]  }
   0x4   :  { %377 = vmatprep.mubr.msk.bf16.mxu0 %vm174_vm0, %v416_v5  ;;  %380 = vmatprep.mubr.msk.bf16.mxu1 %vm174_vm0, %v419_v6  ;;  %v411_v10 = vld [vmem:[%s560_s1 + $0x38] sm:$0xff]   ;;  %v412_v11 = vld [vmem:[%s560_s1 + $0x40] sm:$0xff]   ;;  %v413_v12 = vld [vmem:[%s560_s1 + $0x48] sm:$0xff]  }
   0x5   :  { %v414_v13 = vld [vmem:[%s561_s0] ss:$8 sps:$4 sm:$0xff]   ;;  %v417_v14 = vld [vmem:[%s561_s0 + $0x30] ss:$8 sps:$4 sm:$0xff]   ;;  %v420_v15 = vld [vmem:[%s561_s0 + $0x14] ss:$8 sps:$4 sm:$0xff]  }
   0x6   :  { %193 = vmatpush1.bf16.msra.mxu0 %v405_v2  ;;  %394 = vmatpush1.bf16.msra.mxu1 %v405_v2  ;;  %v423_v16 = vld [vmem:[%s561_s0 + $0x44] ss:$8 sps:$4 sm:$0xff]   ;;  %v422_v17 = vld [vmem:[%s561_s0 + $0x10] ss:$8 sps:$4 sm:$0xff]   ;;  %v425_v18 = vld [vmem:[%s561_s0 + $0x40] ss:$8 sps:$4 sm:$0xff]  }
   0x7   :  { %194 = vmatprep.subr.bf16.mxu0 %v429_v0  ;;  %385 = vmatprep.subr.bf16.mxu1 %v429_v0  ;;  %v426_v19 = vld [vmem:[%s561_s0 + $0x24] ss:$8 sps:$4 sm:$0xff]   ;;  %v428_v20 = vld [vmem:[%s561_s0 + $0x20] ss:$8 sps:$4 sm:$0xff]  }
   0x8   :  { %v518_v21 = vld [vmem:[%s562_s2] ss:$0 sm:$0xff] }
   0xa   :  { %195 = vmatpush1.bf16.msra.mxu0 %v406_v3  ;;  %395 = vmatpush1.bf16.msra.mxu1 %v406_v3 }
   0xb   :  { %196 = vmatprep.subr.bf16.mxu0 %v429_v0  ;;  %386 = vmatprep.subr.bf16.mxu1 %v429_v0 }
   0xe   :  { %197 = vmatpush1.bf16.msra.mxu0 %v407_v4  ;;  %396 = vmatpush1.bf16.msra.mxu1 %v407_v4 }
   0xf   :  { %198 = vmatprep.subr.bf16.mxu0 %v429_v0  ;;  %387 = vmatprep.subr.bf16.mxu1 %v429_v0 }
  0x12   :  { %199 = vmatpush1.bf16.msra.mxu0 %v408_v7  ;;  %397 = vmatpush1.bf16.msra.mxu1 %v408_v7 }
  0x13   :  { %200 = vmatprep.subr.bf16.mxu0 %v429_v0  ;;  %388 = vmatprep.subr.bf16.mxu1 %v429_v0 }
  0x16   :  { %201 = vmatpush1.bf16.msra.mxu0 %v409_v8  ;;  %398 = vmatpush1.bf16.msra.mxu1 %v409_v8 }
  0x17   :  { %202 = vmatprep.subr.bf16.mxu0 %v429_v0  ;;  %389 = vmatprep.subr.bf16.mxu1 %v429_v0 }
  0x1a   :  { %203 = vmatpush1.bf16.msra.mxu0 %v410_v9  ;;  %399 = vmatpush1.bf16.msra.mxu1 %v410_v9 }
  0x1b   :  { %204 = vmatprep.subr.bf16.mxu0 %v429_v0  ;;  %390 = vmatprep.subr.bf16.mxu1 %v429_v0 }
  0x1e   :  { %205 = vmatpush1.bf16.msra.mxu0 %v411_v10  ;;  %400 = vmatpush1.bf16.msra.mxu1 %v411_v10 }
  0x1f   :  { %206 = vmatprep.subr.bf16.mxu0 %v429_v0  ;;  %391 = vmatprep.subr.bf16.mxu1 %v429_v0 }
  0x22   :  { %207 = vmatpush1.bf16.msra.mxu0 %v412_v11  ;;  %401 = vmatpush1.bf16.msra.mxu1 %v412_v11 }
  0x23   :  { %208 = vmatprep.subr.bf16.mxu0 %v429_v0  ;;  %392 = vmatprep.subr.bf16.mxu1 %v429_v0 }
  0x26   :  { %209 = vmatpush1.bf16.msra.mxu0 %v413_v12  ;;  %402 = vmatpush1.bf16.msra.mxu1 %v413_v12 }
  0x29   :  { %223 = vmatmul.mubr.bf16.vlgmr.msra.gmra.mrb[0].mxu0 %v414_v13  ;;  %247 = vmatmul.mubr.bf16.vlgmr.msra.gmra.mrb[0].mxu1 %v417_v14 }
  0x2a   :  { %378 = vmatprep.mubr.msk.bf16.mxu0 %vm174_vm0, %v420_v15  ;;  %381 = vmatprep.mubr.msk.bf16.mxu1 %vm174_vm0, %v423_v16 }
  0x31   :  { %231 = vmatmul.mubr.bf16.gmra.mrb[4].mxu0 %v422_v17  ;;  %255 = vmatmul.mubr.bf16.gmra.mrb[4].mxu1 %v425_v18 }
  0x32   :  { %379 = vmatprep.mubr.msk.bf16.mxu0 %vm174_vm0, %v426_v19 }
  0x39   :  { %239 = vmatmul.mubr.bf16.gmra.mrb[8].mxu0 %v428_v20 }
  0xfc   :  { %v224_v22 = vpop.f32.mrb[0].mxu0  ;;  %v248_v23 = vpop.f32.mrb[0].mxu1 }
  0xfd   :  { %v303_v24 = vadd.f32 %v518_v21, %v224_v22  ;;  %v226_v25 = vpop.f32.mrb[1].mxu0  ;;  %v309_v26 = vadd.f32 %v518_v21, %v248_v23  ;;  %v250_v27 = vpop.f32.mrb[1].mxu1 }
  0xfe   :  { %v227_v28 = vpop.f32.mrb[2].mxu0  ;;  %v251_v29 = vpop.f32.mrb[2].mxu1 }
  0xff   :  { %vm313_vm1 = vcmp.ge.f32.partialorder %v303_v24, 0.0  ;;  %v323_v30 = vmul.f32 0.1, %v303_v24  ;;  %v304_v31 = vadd.f32 %v518_v21, %v227_v28  ;;  %v229_v32 = vpop.f32.mrb[3].mxu0  ;;  %vm319_vm2 = vcmp.ge.f32.partialorder %v309_v26, 0.0  ;;  %v253_v33 = vpop.f32.mrb[3].mxu1 }
 0x100   :  { %v329_v34 = vmul.f32 0.1, %v309_v26  ;;  %v310_v35 = vadd.f32 %v518_v21, %v251_v29 }
 0x101   :  { %v333_v36 = vsel %vm313_vm1, %v303_v24, %v323_v30  ;;  %vm314_vm3 = vcmp.ge.f32.partialorder %v304_v31, 0.0  ;;  %v324_v37 = vmul.f32 0.1, %v304_v31 }
 0x102   :  { %343 = vst [vmem:[%s563_s3] sm:$0xff] %v333_v36  ;;  %v339_v38 = vsel %vm319_vm2, %v309_v26, %v329_v34  ;;  %vm320_vm4 = vcmp.ge.f32.partialorder %v310_v35, 0.0  ;;  %v330_v39 = vmul.f32 0.1, %v310_v35 }
 0x103   :  { %v334_v40 = vsel %vm314_vm3, %v304_v31, %v324_v37  ;;  %349 = vst [vmem:[%s563_s3 + $0x30] sm:$0xff] %v339_v38 }
 0x104   :  { %344 = vst [vmem:[%s563_s3 + $0x8] sm:$0xff] %v334_v40  ;;  %v340_v41 = vsel %vm320_vm4, %v310_v35, %v330_v39  ;;  %v232_v42 = vpop.f32.mrb[4].mxu0  ;;  %v256_v43 = vpop.f32.mrb[4].mxu1 }
 0x105   :  { %350 = vst [vmem:[%s563_s3 + $0x38] sm:$0xff] %v340_v41  ;;  %v305_v44 = vadd.f32 %v518_v21, %v232_v42  ;;  %v234_v45 = vpop.f32.mrb[5].mxu0  ;;  %v311_v46 = vadd.f32 %v518_v21, %v256_v43  ;;  %v258_v47 = vpop.f32.mrb[5].mxu1 }
 0x106   :  { %v235_v48 = vpop.f32.mrb[6].mxu0  ;;  %v259_v49 = vpop.f32.mrb[6].mxu1 }
 0x107   :  { %vm315_vm5 = vcmp.ge.f32.partialorder %v305_v44, 0.0  ;;  %v325_v50 = vmul.f32 0.1, %v305_v44  ;;  %v306_v51 = vadd.f32 %v518_v21, %v235_v48  ;;  %v237_v52 = vpop.f32.mrb[7].mxu0  ;;  %vm321_vm6 = vcmp.ge.f32.partialorder %v311_v46, 0.0  ;;  %v261_v53 = vpop.f32.mrb[7].mxu1 }
 0x108   :  { %v331_v54 = vmul.f32 0.1, %v311_v46  ;;  %v312_v55 = vadd.f32 %v518_v21, %v259_v49 }
 0x109   :  { %v335_v56 = vsel %vm315_vm5, %v305_v44, %v325_v50  ;;  %vm316_vm7 = vcmp.ge.f32.partialorder %v306_v51, 0.0  ;;  %v326_v57 = vmul.f32 0.1, %v306_v51 }
 0x10a   :  { %345 = vst [vmem:[%s563_s3 + $0x10] sm:$0xff] %v335_v56  ;;  %v341_v58 = vsel %vm321_vm6, %v311_v46, %v331_v54  ;;  %vm322_vm8 = vcmp.ge.f32.partialorder %v312_v55, 0.0  ;;  %v332_v59 = vmul.f32 0.1, %v312_v55 }
 0x10b   :  { %v336_v60 = vsel %vm316_vm7, %v306_v51, %v326_v57  ;;  %351 = vst [vmem:[%s563_s3 + $0x40] sm:$0xff] %v341_v58 }
 0x10c   :  { %346 = vst [vmem:[%s563_s3 + $0x18] sm:$0xff] %v336_v60  ;;  %v342_v61 = vsel %vm322_vm8, %v312_v55, %v332_v59  ;;  %v240_v62 = vpop.f32.mrb[8].mxu0 }
 0x10d   :  { %352 = vst [vmem:[%s563_s3 + $0x48] sm:$0xff] %v342_v61  ;;  %v307_v63 = vadd.f32 %v518_v21, %v240_v62  ;;  %v242_v0 = vpop.f32.mrb[9].mxu0 }
 0x10e   :  { %v243_v1 = vpop.f32.mrb[10].mxu0 }
 0x10f   :  { %vm317_vm9 = vcmp.ge.f32.partialorder %v307_v63, 0.0  ;;  %v327_v2 = vmul.f32 0.1, %v307_v63  ;;  %v308_v3 = vadd.f32 %v518_v21, %v243_v1  ;;  %v245_v4 = vpop.f32.mrb[11].mxu0 }
 0x111   :  { %v337_v5 = vsel %vm317_vm9, %v307_v63, %v327_v2  ;;  %vm318_vm10 = vcmp.ge.f32.partialorder %v308_v3, 0.0  ;;  %v328_v6 = vmul.f32 0.1, %v308_v3 }
 0x112   :  { %347 = vst [vmem:[%s563_s3 + $0x20] sm:$0xff] %v337_v5 }
 0x113   :  { %v338_v7 = vsel %vm318_vm10, %v308_v3, %v328_v6 }
 0x114   :  { %348 = vst [vmem:[%s563_s3 + $0x28] sm:$0xff] %v338_v7 }

// kernel: multi_period_discriminator_forward.59
= control target key start
LH: loop header
LB: loop body
LE: loop exit
PB: predicated region body
PF: predicated region fallthrough
CT: control target
= control target key end

     0   :  { %s637_s1 = inlined_call_operand.vmem [shape: bf16[384,128], index: 1, kind: input, shape index: {}]   ;;  %s638_s0 = inlined_call_operand.vmem [shape: bf16[32,384], index: 0, kind: input, shape index: {}]   ;;  %s639_s2 = inlined_call_operand.vmem [shape: f32[1,128], index: 2, kind: input, shape index: {}]   ;;  %s640_s3 = inlined_call_operand.vmem [shape: f32[32,128], index: 3, kind: output, shape index: {}]  }
   0x1   :  { %v480_v0 = vld [vmem:[%s637_s1 + $0x40] sm:$0xff]   ;;  %v483_v3 = vld [vmem:[%s637_s1 + $0x48] sm:$0xff]   ;;  %v486_v6 = vld [vmem:[%s637_s1 + $0x50] sm:$0xff]  }
   0x2   :  { %v481_v1 = vld [vmem:[%s637_s1] sm:$0xff]   ;;  %422 = vmatprep.subr.bf16.mxu0 %v480_v0  ;;  %v484_v4 = vld [vmem:[%s637_s1 + $0x8] sm:$0xff]   ;;  %v487_v7 = vld [vmem:[%s637_s1 + $0x10] sm:$0xff]  }
   0x3   :  { %v482_v2 = vld [vmem:[%s637_s1 + $0x80] sm:$0xff]   ;;  %423 = vmatpush3.bf16.msra.mxu0 %v481_v1  ;;  %v485_v5 = vld [vmem:[%s637_s1 + $0x88] sm:$0xff]   ;;  %v488_v8 = vld [vmem:[%s637_s1 + $0x90] sm:$0xff]  }
   0x4   :  { %460 = vmatprep.subr.bf16.mxu1 %v482_v2  ;;  %424 = vmatprep.subr.bf16.mxu0 %v483_v3  ;;  %v489_v9 = vld [vmem:[%s637_s1 + $0x58] sm:$0xff]   ;;  %v492_v12 = vld [vmem:[%s637_s1 + $0x60] sm:$0xff]   ;;  %v495_v15 = vld [vmem:[%s637_s1 + $0x68] sm:$0xff]  }
   0x5   :  { %461 = vmatpush3.bf16.msra.mxu1 %v482_v2  ;;  %v490_v10 = vld [vmem:[%s637_s1 + $0x18] sm:$0xff]   ;;  %v494_v13 = vld [vmem:[%s637_s1 + $0xa0] sm:$0xff]   ;;  %v497_v16 = vld [vmem:[%s637_s1 + $0xa8] sm:$0xff]  }
   0x6   :  { %462 = vmatprep.subr.bf16.mxu1 %v485_v5  ;;  %v491_v11 = vld [vmem:[%s637_s1 + $0x98] sm:$0xff]   ;;  %v493_v14 = vld [vmem:[%s637_s1 + $0x20] sm:$0xff]   ;;  %v496_v17 = vld [vmem:[%s637_s1 + $0x28] sm:$0xff]  }
   0x7   :  { %425 = vmatpush3.bf16.msra.mxu0 %v484_v4  ;;  %v498_v18 = vld [vmem:[%s637_s1 + $0x70] sm:$0xff]   ;;  %v501_v21 = vld [vmem:[%s637_s1 + $0x78] sm:$0xff]   ;;  %v504_v26 = vld [vmem:[%s638_s0] ss:$12 sps:$4 sm:$0xff]  }
   0x8   :  { %426 = vmatprep.subr.bf16.mxu0 %v486_v6  ;;  %v499_v19 = vld [vmem:[%s637_s1 + $0x30] sm:$0xff]   ;;  %v503_v22 = vld [vmem:[%s637_s1 + $0xb8] sm:$0xff]   ;;  %v508_v28 = vld [vmem:[%s638_s0 + $0x20] ss:$12 sps:$4 sm:$0xff]  }
   0x9   :  { %463 = vmatpush3.bf16.msra.mxu1 %v485_v5  ;;  %v500_v20 = vld [vmem:[%s637_s1 + $0xb0] sm:$0xff]   ;;  %v502_v25 = vld [vmem:[%s637_s1 + $0x38] sm:$0xff]   ;;  %v421_v37 = vld [vmem:[%s639_s2] ss:$0 sm:$0xff] }
   0xa   :  { %464 = vmatprep.subr.bf16.mxu1 %v488_v8  ;;  %v506_v23 = vld [vmem:[%s638_s0 + $0x4] ss:$12 sps:$4 sm:$0xff]   ;;  %v507_v24 = vld [vmem:[%s638_s0 + $0x8] ss:$12 sps:$4 sm:$0xff]  }
   0xb   :  { %427 = vmatpush3.bf16.msra.mxu0 %v487_v7  ;;  %291 = vmatprep.mubr.bf16.mxu0 %v506_v23  ;;  %v509_v27 = vld [vmem:[%s638_s0 + $0x1c] ss:$12 sps:$4 sm:$0xff]   ;;  %v511_v29 = vld [vmem:[%s638_s0 + $0x18] ss:$12 sps:$4 sm:$0xff]  }
   0xc   :  { %428 = vmatprep.subr.bf16.mxu0 %v489_v9  ;;  %476 = vmatprep.mubr.bf16.mxu1 %v507_v24 }
   0xd   :  { %465 = vmatpush3.bf16.msra.mxu1 %v488_v8 }
   0xe   :  { %466 = vmatprep.subr.bf16.mxu1 %v491_v11 }
   0xf   :  { %429 = vmatpush3.bf16.msra.mxu0 %v490_v10 }
  0x10   :  { %430 = vmatprep.subr.bf16.mxu0 %v492_v12 }
  0x11   :  { %467 = vmatpush3.bf16.msra.mxu1 %v491_v11 }
  0x12   :  { %468 = vmatprep.subr.bf16.mxu1 %v494_v13 }
  0x13   :  { %431 = vmatpush3.bf16.msra.mxu0 %v493_v14 }
  0x14   :  { %432 = vmatprep.subr.bf16.mxu0 %v495_v15 }
  0x15   :  { %469 = vmatpush3.bf16.msra.mxu1 %v494_v13 }
  0x16   :  { %470 = vmatprep.subr.bf16.mxu1 %v497_v16 }
  0x17   :  { %433 = vmatpush3.bf16.msra.mxu0 %v496_v17 }
  0x18   :  { %434 = vmatprep.subr.bf16.mxu0 %v498_v18 }
  0x19   :  { %471 = vmatpush3.bf16.msra.mxu1 %v497_v16 }
  0x1a   :  { %472 = vmatprep.subr.bf16.mxu1 %v500_v20 }
  0x1b   :  { %435 = vmatpush3.bf16.msra.mxu0 %v499_v19 }
  0x1c   :  { %436 = vmatprep.subr.bf16.mxu0 %v501_v21 }
  0x1d   :  { %473 = vmatpush3.bf16.msra.mxu1 %v500_v20 }
  0x1e   :  { %474 = vmatprep.subr.bf16.mxu1 %v503_v22 }
  0x1f   :  { %437 = vmatpush3.bf16.msra.mxu0 %v502_v25 }
  0x21   :  { %475 = vmatpush3.bf16.msra.mxu1 %v503_v22 }
  0x22   :  { %292 = vmatmul.mubr.bf16.vlgmr.msra.gmra.mrb[0].mxu0 %v504_v26 }
  0x23   :  { %299 = vmatprep.mubr.bf16.mxu0 %v509_v27 }
  0x24   :  { %477 = vmatmul.mubr.bf16.vlgmr.msra.gmra.mrb[0].mxu1 %v508_v28 }
  0x2a   :  { %300 = vmatmul.mubr.bf16.gmra.mrb[4].mxu0 %v511_v29 }
  0xf5   :  { %v438_v30 = vpop.f32.mrb[0].mxu0 }
  0xf6   :  { %v439_v31 = vpop.f32.mrb[1].mxu0 }
  0xf7   :  { %v440_v32 = vadd.f32 %v439_v31, %v438_v30  ;;  %v441_v33 = vpop.f32.mrb[2].mxu0  ;;  %v478_v34 = vpop.f32.mrb[0].mxu1 }
  0xf8   :  { %v442_v35 = vpop.f32.mrb[3].mxu0  ;;  %v342_v36 = vpop.f32.mrb[1].mxu1 }
  0xf9   :  { %v443_v38 = vadd.f32 %v442_v35, %v441_v33  ;;  %v343_v39 = vadd.f32 %v440_v32, %v342_v36  ;;  %v479_v40 = vpop.f32.mrb[2].mxu1 }
  0xfa   :  { %v345_v41 = vpop.f32.mrb[3].mxu1 }
  0xfb   :  { %v379_v42 = vadd.f32 %v421_v37, %v343_v39  ;;  %v346_v43 = vadd.f32 %v443_v38, %v345_v41 }
  0xfd   :  { %383 = vst [vmem:[%s640_s3] sm:$0xff] %v379_v42  ;;  %v380_v44 = vadd.f32 %v421_v37, %v346_v43  ;;  %v444_v45 = vpop.f32.mrb[4].mxu0 }
  0xfe   :  { %v445_v46 = vpop.f32.mrb[5].mxu0 }
  0xff   :  { %384 = vst [vmem:[%s640_s3 + $0x8] sm:$0xff] %v380_v44  ;;  %v446_v47 = vadd.f32 %v445_v46, %v444_v45  ;;  %v447_v48 = vpop.f32.mrb[6].mxu0 }
 0x100   :  { %v448_v49 = vpop.f32.mrb[7].mxu0 }
 0x101   :  { %v351_v50 = vadd.f32 %v478_v34, %v446_v47  ;;  %v449_v51 = vadd.f32 %v448_v49, %v447_v48 }
 0x103   :  { %v381_v52 = vadd.f32 %v421_v37, %v351_v50  ;;  %v354_v53 = vadd.f32 %v479_v40, %v449_v51 }
 0x105   :  { %385 = vst [vmem:[%s640_s3 + $0x10] sm:$0xff] %v381_v52  ;;  %v382_v54 = vadd.f32 %v421_v37, %v354_v53 }
 0x107   :  { %386 = vst [vmem:[%s640_s3 + $0x18] sm:$0xff] %v382_v54 }

</bundles_post_ra>
